<compile_context>
chip_gen: v7x
topology: tpu7x:2x2x1
jax: 0.10.0
libtpu: 0.0.40
codegen_flags: <defaults>
</compile_context>

<pallas_src>
import functools
import math

import jax
import jax.numpy as jnp
from jax.experimental import pallas as pl
from jax.experimental.pallas import tpu as pltpu

_LANE = 128
_MIB = 1024 * 1024


def _round_up(x, m):
    return ((x + m - 1) // m) * m


def _vmem_budget_bytes():
    """Per-TensorCore VMEM budget with ~20% headroom for compiler scratch."""
    cap = 64 * _MIB                          # v7x-safe fallback
    try:
        got = int(pltpu.get_tpu_info().vmem_capacity_bytes)
        if got > 0:
            cap = got
    except Exception:
        pass
    return max(32 * _MIB, min(100 * _MIB, int(0.80 * cap)))


_VMEM_BUDGET = _vmem_budget_bytes()


def _choose_tile(n):
    """Largest power-of-two tile in [128, 1024] keeping >= 2 row blocks."""
    n128 = _round_up(n, _LANE)
    t = 1024
    while t > _LANE and n128 < 2 * t:
        t //= 2
    return t


# ---------------------------------------------------------------------------
# Fused path: all GCN layers in one pallas_call, adjacency VMEM-resident.
# ---------------------------------------------------------------------------
def _fused_gcn_kernel(adj_ref, emb0_ref, out_embeds_ref, out_sum_ref,
                      cur_ref, sum_ref):
    l = pl.program_id(0)

    @pl.when(l == 0)
    def _():
        cur_ref[...] = emb0_ref[...].astype(cur_ref.dtype)
        sum_ref[...] = emb0_ref[...]

    nxt = jnp.dot(adj_ref[...], cur_ref[...],
                  preferred_element_type=jnp.float32)
    out_embeds_ref[0] = nxt                       # this layer's f32 embedding
    sum_ref[...] = sum_ref[...] + nxt
    cur_ref[...] = nxt.astype(cur_ref.dtype)      # bf16 carry for next layer

    @pl.when(l == pl.num_programs(0) - 1)
    def _():
        out_sum_ref[...] = sum_ref[...]


@functools.partial(jax.jit, static_argnames=("num_layers", "vmem_limit"))
def _fused_gcn(adj_bf16, emb0_f32, *, num_layers, vmem_limit):
    n_pad = adj_bf16.shape[0]
    h_pad = emb0_f32.shape[1]

    cost = pl.CostEstimate(
        flops=2 * num_layers * n_pad * n_pad * h_pad,
        transcendentals=0,
        bytes_accessed=(n_pad * n_pad * 2                 # adj, read once total
                        + n_pad * h_pad * 4               # emb0
                        + (num_layers + 1) * n_pad * h_pad * 4))

    out_embeds, out_sum = pl.pallas_call(
        _fused_gcn_kernel,
        out_shape=(jax.ShapeDtypeStruct((num_layers, n_pad, h_pad),
                                        jnp.float32),
                   jax.ShapeDtypeStruct((n_pad, h_pad), jnp.float32)),
        grid_spec=pltpu.PrefetchScalarGridSpec(
            num_scalar_prefetch=0,
            grid=(num_layers,),
            in_specs=[
                # Whole-array, single-buffered VMEM residents.
                pl.BlockSpec(memory_space=pltpu.MemorySpace.VMEM),   # adj
                pl.BlockSpec(memory_space=pltpu.MemorySpace.VMEM),   # emb0
            ],
            out_specs=[
                pl.BlockSpec((1, n_pad, h_pad), lambda l: (l, 0, 0)),
                pl.BlockSpec((n_pad, h_pad), lambda l: (0, 0)),
            ],
            scratch_shapes=[
                pltpu.VMEM((n_pad, h_pad), jnp.bfloat16),   # bf16 layer carry
                pltpu.VMEM((n_pad, h_pad), jnp.float32),    # f32 running sum
            ],
        ),
        compiler_params=pltpu.CompilerParams(
            dimension_semantics=("arbitrary",),             # layers are serial
            vmem_limit_bytes=vmem_limit),
        cost_estimate=cost,
    )(adj_bf16, emb0_f32)
    return out_embeds, out_sum


# ---------------------------------------------------------------------------
# Tiled path: one pallas_call per layer, block-sparse adjacency streaming.
# ---------------------------------------------------------------------------
def _gcn_layer_kernel(knnz_ref, kidx_ref, adj_ref, emb_ref, sum_in_ref,
                      out_emb_ref, out_emb_bf16_ref, out_sum_ref, acc_ref,
                      *, tk, gk, emb_resident):
    i = pl.program_id(0)
    k = pl.program_id(1)

    @pl.when(k == 0)
    def _():
        acc_ref[...] = jnp.zeros_like(acc_ref)

    # Only the first knnz[i] steps correspond to nonzero adjacency blocks; the
    # adj index_map repeats the last valid block index for the tail steps, so
    # their DMAs are elided and the MXU work is skipped here.
    @pl.when(k < knnz_ref[i])
    def _():
        if emb_resident:
            k0 = pl.multiple_of(kidx_ref[i * gk + k] * tk, tk)
            emb_blk = emb_ref[pl.ds(k0, tk), :]
        else:
            emb_blk = emb_ref[...]
        acc_ref[...] += jnp.dot(adj_ref[...], emb_blk,
                                preferred_element_type=jnp.float32)

    @pl.when(k == pl.num_programs(1) - 1)
    def _():
        out_emb_ref[...] = acc_ref[...]
        out_emb_bf16_ref[...] = acc_ref[...].astype(jnp.bfloat16)
        out_sum_ref[...] = sum_in_ref[...] + acc_ref[...]


@functools.partial(jax.jit,
                   static_argnames=("tm", "tk", "emb_resident", "vmem_limit"))
def _gcn_layer(knnz, kidx, adj_bf16, emb_bf16, sum_f32, *, tm, tk,
               emb_resident, vmem_limit):
    n_pad = adj_bf16.shape[0]
    h_pad = emb_bf16.shape[1]
    gi, gk = n_pad // tm, n_pad // tk

    adj_spec = pl.BlockSpec(
        (tm, tk), lambda i, k, knnz_r, kidx_r: (i, kidx_r[i * gk + k]))
    if emb_resident:
        # Whole bf16 embedding resident in VMEM, single-buffered.
        emb_spec = pl.BlockSpec(memory_space=pltpu.MemorySpace.VMEM)
    else:
        emb_spec = pl.BlockSpec(
            (tk, h_pad), lambda i, k, knnz_r, kidx_r: (kidx_r[i * gk + k], 0))
    row_spec = pl.BlockSpec((tm, h_pad), lambda i, k, knnz_r, kidx_r: (i, 0))

    cost = pl.CostEstimate(
        flops=2 * n_pad * n_pad * h_pad,            # dense upper bound
        transcendentals=0,
        bytes_accessed=(n_pad * n_pad * 2           # adj (bf16), upper bound
                        + n_pad * h_pad * 2         # emb (bf16)
                        + n_pad * h_pad * (4 + 4 + 2 + 4)))

    kernel = functools.partial(_gcn_layer_kernel, tk=tk, gk=gk,
                               emb_resident=emb_resident)

    out_emb, out_emb_bf16, out_sum = pl.pallas_call(
        kernel,
        out_shape=(jax.ShapeDtypeStruct((n_pad, h_pad), jnp.float32),
                   jax.ShapeDtypeStruct((n_pad, h_pad), jnp.bfloat16),
                   jax.ShapeDtypeStruct((n_pad, h_pad), jnp.float32)),
        grid_spec=pltpu.PrefetchScalarGridSpec(
            num_scalar_prefetch=2,                  # knnz, kidx -> SMEM
            grid=(gi, gk),
            in_specs=[adj_spec, emb_spec, row_spec],
            out_specs=[row_spec, row_spec, row_spec],
            scratch_shapes=[pltpu.VMEM((tm, h_pad), jnp.float32)],
        ),
        compiler_params=pltpu.CompilerParams(
            dimension_semantics=("parallel", "arbitrary"),
            vmem_limit_bytes=vmem_limit),
        cost_estimate=cost,
    )(knnz, kidx, adj_bf16, emb_bf16, sum_f32)
    return out_emb, out_emb_bf16, out_sum


# ---------------------------------------------------------------------------
# Encoder module
# ---------------------------------------------------------------------------
def xavier_uniform(key, shape, dtype=jnp.float32):
    fan_in, fan_out = shape
    bound = math.sqrt(6.0 / (fan_in + fan_out))
    return jax.random.uniform(key, shape, dtype, minval=-bound, maxval=bound)


class Encoder:
    """JAX/Pallas port of MAERec Encoder (forward semantics preserved)."""

    def __init__(self, num_items, hidden_size, num_gcn_layers, key):
        self.num_gcn_layers = num_gcn_layers
        self.item_emb = xavier_uniform(key, (num_items, hidden_size))
        self._adj_cache_key = None
        self._adj_cache = None

    def get_ego_embeds(self):
        return self.item_emb

    # Host-side preparation, cached across forward calls (adj is static).
    def _prepare(self, encoder_adj, force_tiled):
        if (self._adj_cache is not None
                and self._adj_cache_key is encoder_adj
                and self._adj_cache["force_tiled"] == force_tiled):
            return self._adj_cache

        n, h = self.item_emb.shape
        h_pad = _round_up(h, _LANE)

        # Fused (whole adjacency VMEM-resident for all layers) feasibility.
        n_pad_f = _round_up(n, _LANE)
        fused_need = (n_pad_f * n_pad_f * 2                   # adj (bf16)
                      + n_pad_f * h_pad * (4 + 2 + 4 + 4)     # emb0,cur,sum,nxt
                      + 2 * n_pad_f * h_pad * 4               # out_embeds blk
                      + 2 * n_pad_f * h_pad * 4)              # out_sum
        use_fused = (not force_tiled) and fused_need <= int(0.7 * _VMEM_BUDGET)

        if use_fused:
            n_pad, tm, tk, gi, gk = n_pad_f, None, None, None, None
        else:
            tm = tk = _choose_tile(n)
            n_pad = _round_up(n, tm)
            gi, gk = n_pad // tm, n_pad // tk

        adj_p = jnp.zeros((n_pad, n_pad), jnp.bfloat16)
        adj_p = adj_p.at[:n, :n].set(encoder_adj.astype(jnp.bfloat16))

        cache = dict(force_tiled=force_tiled, use_fused=use_fused,
                     n_pad=n_pad, h_pad=h_pad, tm=tm, tk=tk,
                     adj=adj_p, vmem_limit=_VMEM_BUDGET)

        if not use_fused:
            # Compressed per-row-block nonzero k-block list (1D SMEM arrays).
            nz = jnp.any(adj_p.reshape(gi, tm, gk, tk) != 0, axis=(1, 3))
            knnz = jnp.sum(nz, axis=1).astype(jnp.int32)              # (gi,)
            order = jnp.argsort(jnp.logical_not(nz).astype(jnp.int32), axis=1)
            pos = jnp.broadcast_to(jnp.arange(gk)[None, :], (gi, gk))
            clamp = jnp.minimum(pos, jnp.maximum(knnz[:, None] - 1, 0))
            kidx = jnp.take_along_axis(order, clamp, axis=1)
            cache["knnz"] = knnz
            cache["kidx"] = kidx.reshape(-1).astype(jnp.int32)

            # Resident bf16 embedding (single-buffered) if the tiling fits.
            fixed = (2 * tm * tk * 2                        # adj tile x2
                     + 2 * tm * h_pad * (4 + 4 + 2 + 4)     # sum_in + 3 outs
                     + tm * h_pad * 4)                      # f32 accumulator
            cache["emb_resident"] = (fixed + n_pad * h_pad * 2) <= _VMEM_BUDGET

        self._adj_cache_key = encoder_adj
        self._adj_cache = cache
        return cache

    def forward(self, encoder_adj, force_tiled=False):
        n, h = self.item_emb.shape
        if self.num_gcn_layers == 0:
            return self.item_emb, [self.item_emb]

        c = self._prepare(encoder_adj, force_tiled)
        n_pad, h_pad = c["n_pad"], c["h_pad"]

        emb_p = jnp.zeros((n_pad, h_pad), jnp.float32)
        emb_p = emb_p.at[:n, :h].set(self.item_emb)

        embeds = [self.item_emb]
        if c["use_fused"]:
            layer_embs, out_sum = _fused_gcn(
                c["adj"], emb_p, num_layers=self.num_gcn_layers,
                vmem_limit=c["vmem_limit"])
            for l in range(self.num_gcn_layers):
                embeds.append(layer_embs[l, :n, :h])
        else:
            cur_bf16 = emb_p.astype(jnp.bfloat16)     # only the initial cast
            running = emb_p
            for _ in range(self.num_gcn_layers):
                out_f32, cur_bf16, running = _gcn_layer(
                    c["knnz"], c["kidx"], c["adj"], cur_bf16, running,
                    tm=c["tm"], tk=c["tk"], emb_resident=c["emb_resident"],
                    vmem_limit=c["vmem_limit"])
                embeds.append(out_f32[:n, :h])
            out_sum = running
        return out_sum[:n, :h], embeds


if __name__ == "__main__":
    # Small config; N and H deliberately NOT tile multiples to exercise the
    # padding path: num_items=300, hidden=96, 2 GCN layers.
    num_items, hidden_size, num_gcn_layers = 300, 96, 2

    key = jax.random.PRNGKey(0)
    k_emb, k_adj = jax.random.split(key)

    enc = Encoder(num_items, hidden_size, num_gcn_layers, k_emb)

    # Deterministic dense "normalized adjacency" (stand-in for the sparse adj).
    raw = jax.random.uniform(k_adj, (num_items, num_items), jnp.float32)
    adj = (raw > 0.9).astype(jnp.float32)
    adj = adj + jnp.eye(num_items, dtype=jnp.float32)
    deg = jnp.sum(adj, axis=1, keepdims=True)
    adj = adj / jnp.maximum(deg, 1.0)                 # row-normalized
    # Carve out an all-zero 128x128 block so the tiled path's DMA-level
    # zero-block skip is exercised.
    adj = adj.at[:128, 128:256].set(0.0)

    # Reference 1: matches the kernel's bf16-input / f32-accumulate matmul.
    adj_bf = adj.astype(jnp.bfloat16)
    ref_embeds = [enc.item_emb]
    for _ in range(num_gcn_layers):
        prev = ref_embeds[-1].astype(jnp.bfloat16)
        ref_embeds.append(jnp.dot(adj_bf, prev,
                                  preferred_element_type=jnp.float32))
    ref_sum = sum(ref_embeds)

    # Reference 2: full-f32 torch semantics, loose tolerance for bf16 inputs.
    f32_embeds = [enc.item_emb]
    for _ in range(num_gcn_layers):
        f32_embeds.append(adj @ f32_embeds[-1])
    f32_sum = sum(f32_embeds)

    for path_name, force_tiled in (("fused", False), ("tiled", True)):
        out_sum, embed_list = enc.forward(adj, force_tiled=force_tiled)
        out_sum = jax.block_until_ready(out_sum)
        embed_list = [jax.block_until_ready(e) for e in embed_list]
        assert out_sum.shape == (num_items, hidden_size), path_name
        assert len(embed_list) == num_gcn_layers + 1, path_name

        for got, ref in zip(embed_list, ref_embeds):
            assert jnp.allclose(got, ref, atol=2e-3, rtol=2e-3), path_name
        assert jnp.allclose(out_sum, ref_sum, atol=2e-3, rtol=2e-3), path_name
        assert jnp.allclose(out_sum, f32_sum, atol=2e-2, rtol=2e-2), path_name

    print("KERNEL_OK")
</pallas_src>

<mosaic_0001>
module attributes {stable_mosaic.version = 11 : i64} {
  func.func @_fused_gcn_kernel(%arg0: i32, %arg1: memref<384x384xbf16, #tpu.memory_space<vmem>>, %arg2: memref<384x128xf32, #tpu.memory_space<vmem>>, %arg3: memref<1x384x128xf32, #tpu.memory_space<vmem>>, %arg4: memref<384x128xf32, #tpu.memory_space<vmem>>, %arg5: memref<384x128xbf16, #tpu.memory_space<vmem>>, %arg6: memref<384x128xf32, #tpu.memory_space<vmem>>) attributes {dimension_semantics = [#tpu.dimension_semantics<arbitrary>], iteration_bounds = array<i64: 2>, scalar_prefetch = 0 : i64, scratch_operands = 2 : i64, tpu.core_type = #tpu.core_type<tc>, window_params = [{pipeline_mode = #tpu.pipeline_mode<synchronous>, transform_indices = @transform_0, window_bounds = array<i64: 384, 384>}, {pipeline_mode = #tpu.pipeline_mode<synchronous>, transform_indices = @transform_1, window_bounds = array<i64: 384, 128>}, {transform_indices = @transform_2, window_bounds = array<i64: 1, 384, 128>}, {pipeline_mode = #tpu.pipeline_mode<synchronous>, transform_indices = @transform_3, window_bounds = array<i64: 384, 128>}]} {
    %c0_i32 = arith.constant 0 : i32
    %0 = arith.cmpi eq, %arg0, %c0_i32 : i32
    %1 = arith.extui %0 : i1 to i32
    %c0_i32_0 = arith.constant 0 : i32
    %2 = arith.cmpi ne, %1, %c0_i32_0 : i32
    scf.if %2 {
      %c0_14 = arith.constant 0 : index
      %c0_15 = arith.constant 0 : index
      %17 = vector.load %arg2[%c0_14, %c0_15] : memref<384x128xf32, #tpu.memory_space<vmem>>, vector<384x128xf32>
      %18 = arith.truncf %17 : vector<384x128xf32> to vector<384x128xbf16>
      %c0_16 = arith.constant 0 : index
      %c0_17 = arith.constant 0 : index
      %19 = vector.load %arg5[%c0_16, %c0_17] : memref<384x128xbf16, #tpu.memory_space<vmem>>, vector<384x128xbf16>
      tpu.vector_store %arg5[%c0_16, %c0_17], %18 {strides = array<i32>} : memref<384x128xbf16, #tpu.memory_space<vmem>>, vector<384x128xbf16>,
      %c0_18 = arith.constant 0 : index
      %c0_19 = arith.constant 0 : index
      %20 = vector.load %arg2[%c0_18, %c0_19] : memref<384x128xf32, #tpu.memory_space<vmem>>, vector<384x128xf32>
      %c0_20 = arith.constant 0 : index
      %c0_21 = arith.constant 0 : index
      %21 = vector.load %arg6[%c0_20, %c0_21] : memref<384x128xf32, #tpu.memory_space<vmem>>, vector<384x128xf32>
      tpu.vector_store %arg6[%c0_20, %c0_21], %20 {strides = array<i32>} : memref<384x128xf32, #tpu.memory_space<vmem>>, vector<384x128xf32>,
    } else {
    }
    %c0 = arith.constant 0 : index
    %c0_1 = arith.constant 0 : index
    %3 = vector.load %arg1[%c0, %c0_1] : memref<384x384xbf16, #tpu.memory_space<vmem>>, vector<384x384xbf16>
    %c0_2 = arith.constant 0 : index
    %c0_3 = arith.constant 0 : index
    %4 = vector.load %arg5[%c0_2, %c0_3] : memref<384x128xbf16, #tpu.memory_space<vmem>>, vector<384x128xbf16>
    %cst = arith.constant dense<0.000000e+00> : vector<384x128xf32>
    %5 = tpu.matmul %3, %4, %cst {dimension_numbers = #tpu.dot_dimension_numbers<[1], [0], [0], [1], [0, 0, 1, 1], [], []>} : vector<384x384xbf16>, vector<384x128xbf16>, vector<384x128xf32> -> vector<384x128xf32>
    %c0_4 = arith.constant 0 : index
    %c0_5 = arith.constant 0 : index
    %c0_6 = arith.constant 0 : index
    %6 = vector.load %arg3[%c0_4, %c0_5, %c0_6] : memref<1x384x128xf32, #tpu.memory_space<vmem>>, vector<1x384x128xf32>
    %7 = vector.shape_cast %6 : vector<1x384x128xf32> to vector<384x128xf32>
    %8 = vector.shape_cast %5 : vector<384x128xf32> to vector<1x384x128xf32>
    tpu.vector_store %arg3[%c0_4, %c0_5, %c0_6], %8 {strides = array<i32>} : memref<1x384x128xf32, #tpu.memory_space<vmem>>, vector<1x384x128xf32>,
    %c0_7 = arith.constant 0 : index
    %c0_8 = arith.constant 0 : index
    %9 = vector.load %arg6[%c0_7, %c0_8] : memref<384x128xf32, #tpu.memory_space<vmem>>, vector<384x128xf32>
    %10 = arith.addf %9, %5 : vector<384x128xf32>
    %c0_9 = arith.constant 0 : index
    %c0_10 = arith.constant 0 : index
    %11 = vector.load %arg6[%c0_9, %c0_10] : memref<384x128xf32, #tpu.memory_space<vmem>>, vector<384x128xf32>
    tpu.vector_store %arg6[%c0_9, %c0_10], %10 {strides = array<i32>} : memref<384x128xf32, #tpu.memory_space<vmem>>, vector<384x128xf32>,
    %12 = arith.truncf %5 : vector<384x128xf32> to vector<384x128xbf16>
    %c0_11 = arith.constant 0 : index
    %c0_12 = arith.constant 0 : index
    %13 = vector.load %arg5[%c0_11, %c0_12] : memref<384x128xbf16, #tpu.memory_space<vmem>>, vector<384x128xbf16>
    tpu.vector_store %arg5[%c0_11, %c0_12], %12 {strides = array<i32>} : memref<384x128xbf16, #tpu.memory_space<vmem>>, vector<384x128xbf16>,
    %c1_i32 = arith.constant 1 : i32
    %14 = arith.cmpi eq, %arg0, %c1_i32 : i32
    %15 = arith.extui %14 : i1 to i32
    %c0_i32_13 = arith.constant 0 : i32
    %16 = arith.cmpi ne, %15, %c0_i32_13 : i32
    scf.if %16 {
      %c0_14 = arith.constant 0 : index
      %c0_15 = arith.constant 0 : index
      %17 = vector.load %arg6[%c0_14, %c0_15] : memref<384x128xf32, #tpu.memory_space<vmem>>, vector<384x128xf32>
      %c0_16 = arith.constant 0 : index
      %c0_17 = arith.constant 0 : index
      %18 = vector.load %arg4[%c0_16, %c0_17] : memref<384x128xf32, #tpu.memory_space<vmem>>, vector<384x128xf32>
      tpu.vector_store %arg4[%c0_16, %c0_17], %17 {strides = array<i32>} : memref<384x128xf32, #tpu.memory_space<vmem>>, vector<384x128xf32>,
    } else {
    }
    return
  }
  func.func @transform_0(%arg0: i32) -> (i32, i32) {
    %c0_i32 = arith.constant 0 : i32
    %c0_i32_0 = arith.constant 0 : i32
    %c0_i32_1 = arith.constant 0 : i32
    return %c0_i32, %c0_i32_0 : i32, i32
  }
  func.func @transform_1(%arg0: i32) -> (i32, i32) {
    %c0_i32 = arith.constant 0 : i32
    %c0_i32_0 = arith.constant 0 : i32
    %c0_i32_1 = arith.constant 0 : i32
    return %c0_i32, %c0_i32_0 : i32, i32
  }
  func.func @transform_2(%arg0: i32) -> (i32, i32, i32) {
    %c0_i32 = arith.constant 0 : i32
    %c0_i32_0 = arith.constant 0 : i32
    %c0_i32_1 = arith.constant 0 : i32
    return %arg0, %c0_i32, %c0_i32_0 : i32, i32, i32
  }
  func.func @transform_3(%arg0: i32) -> (i32, i32) {
    %c0_i32 = arith.constant 0 : i32
    %c0_i32_0 = arith.constant 0 : i32
    %c0_i32_1 = arith.constant 0 : i32
    return %c0_i32, %c0_i32_0 : i32, i32
  }
}

</mosaic_0001>

<bundles_post_ra>
// kernel: _fused_gcn.1
= control target key start
LH: loop header
LB: loop body
LE: loop exit
PB: predicated region body
PF: predicated region fallthrough
CT: control target
= control target key end

     0   :  { %9 = vsyncpa [#allocation5], 0  ;;  %s2729_s0 = inlined_call_operand.hbm [shape: bf16[384,384], index: 0, kind: input, shape index: {}]   ;;  %s2730_s1 = inlined_call_operand.hbm [shape: f32[384,128], index: 1, kind: input, shape index: {}]   ;;  %s2731_s2 = inlined_call_operand.hbm [shape: f32[2,384,128], index: 2, kind: output, shape index: {0}]   ;;  %s2732_s3 = inlined_call_operand.hbm [shape: f32[384,128], index: 3, kind: output, shape index: {1}]  }
   0x1   :  { %10 = vsyncpa [#allocation8], 0 }
   0x2   :  { %11 = vsyncpa [#allocation6], 0 }
   0x3   :  { %13 = vsyncpa [#allocation6 + $0x1], 0 }
   0x4   :  { %14 = vsyncpa [#allocation11], 0  ;;  %s2354_s12 = smov 0   ;;  %s2356_s13 = smov 0  }
   0x5   :  { %s2358_s14 = smov 0   ;;  %s2360_s15 = smov 0  }
   0x6 LB: > { %s2375_s16 = sadd.s32 4294967295, %s2321_s15   ;;  %s1779_s17 = sadd.s32 4294967294, %s2321_s15   ;;  %s2321_s15 = sphi %s2360_s15, %s2757_s15   ;;  %s2317_s14 = sphi %s2358_s14, %s2756_s14   ;;  %s2313_s13 = sphi %s2356_s13, %s2755_s13   ;;  %s2309_s12 = sphi %s2354_s12, %s2754_s12  }
   0x7   : > { %s2379_s18 = sadd.s32 1, %s2321_s15   ;;  %s69_s19 = sadd.s32 1, %s2317_s14 }
   0x8   : > { %s66_s20 = ssub.s32 %s2321_s15, %s2379_s18  ;;  %p79_p0 = scmp.ne.s32.totalorder %s2317_s14, %s2313_s13 }
   0x9   : > { %p67_p1 = scmp.eq.s32.totalorder %s66_s20, 0  ;;  %p2733_p2 = scmp.eq.s32.totalorder %s2375_s16, 1 }
   0xa   : > { %p85_p3 = scmp.ne.s32.totalorder %s2313_s13, %s2309_s12  ;;  %p86_p4 = scmp.eq.s32.totalorder %s1779_s17, 1 }
   0xb   : > { %s2390_s21 = scalar_select %p67_p1, %s2317_s14, %s69_s19  }
   0xc   : > { %p2394_p5 = por %p2733_p2, %p79_p0  ;;  %p2398_p6 = por %p86_p4, %p85_p3 }
   0xd   : > { %p1780_p7 = scmp.ge.s32.totalorder %s2321_s15, 1  ;;  %p114_p8 = scmp.lt.s32.totalorder %s2321_s15, 3 }
   0xe   : > { %s2737_s22 = scalar_select %p2394_p5, 1, 0 }
   0xf   : > { %s2738_s23 = scalar_select %p2398_p6, 1, 0 }
  0x10   : > { %p2734_p10 = scmp.eq.s32.totalorder %s2375_s16, 0  ;;  %p2406_p11 = pnand %p1780_p7, %p114_p8 }
  0x11   : > { %s2323_s25 = smov [#allocation4]   ;;  %s2324_s28 = smov [#allocation7]  }
  0x12   : > { %s2739_s24 = scalar_select %p2406_p11, 1, 0 }
  0x13   : > { %s126_s26 = sshll.u32 %s2323_s25, 4  ;;  %p2009_p12 = pneg %p2406_p11  ;;  %s127_s26 = int_to_ptr.vmem [resolvable:$true] %s126_s26 }
  0x14   : > { %s139_s29 = sshll.u32 %s2324_s28, 4  ;;  %s2165_s5 = scalar_lea.hbm %s2729_s0, 9216  ;;  %s2418_s29 = int_to_ptr.vmem [resolvable:$true] %s139_s29 }
  0x15   : > { %p2414_p13 = pnand %p2734_p10, %p2009_p12  ;;  %p2166_p0 = scmp.ne.s32.totalorder %s2729_s0, %s2165_s5 }
  0x16   : > { %p2172_p7 = scmp.lt.u32.totalorder %s2165_s5, %s2729_s0 }
  0x17   : > { %p2167_p1 = pneg %p2414_p13 }
  0x19   : > { %p2168_p3 = pnand %p2167_p1, %p2166_p0 }
  0x1b   : > { %p2169_p4 = pneg %p2168_p3 }
  0x1d   : > { %p2174_p8 = pnand %p2172_p7, %p2169_p4 }
  0x1f   : > { %2177 = shalt.err (!%p2174_p8)
}
  0x20   : > { %s2178_s10 = scalar_lea.vmem %s127_s26, 9216  ;;  %p2186_p10 = scmp.lt.s32.totalorder %s127_s26, %s127_s26 }
  0x21   : > { %p2179_p12 = scmp.ne.s32.totalorder %s127_s26, %s2178_s10  ;;  %p2187_p6 = scmp.lt.s32.totalorder %s2178_s10, %s2178_s10 }
  0x23   : > { %p2181_p2 = pnand %p2179_p12, %p2167_p1  ;;  %p2188_p5 = por %p2187_p6, %p2186_p10 }
  0x25   : > { %p2182_p9 = pneg %p2181_p2 }
  0x27   : > { %p2189_p11 = pnand %p2188_p5, %p2182_p9 }
  0x29   : > { %2192 = shalt.err (!%p2189_p11)
}
  0x2a   : > { %s2325_s11 = smov 192   ;;  %s2326_s17 = smov 12  }
  0x2b   : > { %2012 = dma.hbm_to_vmem [thread:$0]  (!%p2414_p13), %s2729_s0, 9216, %s127_s26, [#allocation5], %s2325_s11, %s2325_s11, %s2326_s17  }
  0x2c   : > { %s2193_s30 = scalar_lea.hbm %s2730_s1, 6144 }
  0x2d   : > { %p2194_p2 = scmp.ne.s32.totalorder %s2730_s1, %s2193_s30  ;;  %p2200_p9 = scmp.lt.u32.totalorder %s2193_s30, %s2730_s1 }
  0x2f   : > { %p2196_p5 = pnand %p2194_p2, %p2167_p1 }
  0x31   : > { %p2197_p6 = pneg %p2196_p5 }
  0x33   : > { %p2202_p10 = pnand %p2200_p9, %p2197_p6 }
  0x35   : > { %2205 = shalt.err (!%p2202_p10)
}
  0x36   : > { %s2206_s26 = scalar_lea.vmem %s2418_s29, 6144  ;;  %p2214_p4 = scmp.lt.s32.totalorder %s2418_s29, %s2418_s29 }
  0x37   : > { %p2207_p11 = scmp.ne.s32.totalorder %s2418_s29, %s2206_s26  ;;  %p2215_p7 = scmp.lt.s32.totalorder %s2206_s26, %s2206_s26 }
  0x39   : > { %p2209_p0 = pnand %p2207_p11, %p2167_p1  ;;  %p2216_p8 = por %p2215_p7, %p2214_p4 }
  0x3b   : > { %p2210_p3 = pneg %p2209_p0 }
  0x3d   : > { %p2217_p12 = pnand %p2216_p8, %p2210_p3 }
  0x3f   : > { %2220 = shalt.err (!%p2217_p12)
}
  0x40   : > { %s2327_s8 = smov 128   ;;  %s2328_s9 = smov 8  }
  0x41   : > { %2015 = dma.hbm_to_vmem [thread:$0]  (!%p2414_p13), %s2730_s1, 6144, %s2418_s29, [#allocation8], %s2327_s8, %s2327_s8, %s2328_s9  }
  0x42   : > { %p2741_p2 = scmp.ne.s32.totalorder %s2739_s24, 0 }
  0x43   : > { %p2742_p1 = scmp.eq.s32.totalorder (!%p2741_p2), %s2375_s16, 0 }
  0x44   : > { %155 = sbr.rel (%p2741_p2) target bundleno = 621 (0x26d), region = 28 }
  0x4b   : > { %2292 = dma.done.wait (%p2742_p1), [#allocation5], 9216   ;;  %p2743_p5 = pmov %p2742_p1 }
  0x4c   : > { %p2744_p6 = pmov %p2742_p1 }
  0x4d   : > { %2294 = vsyncadd (%p2743_p5), [#allocation5], 4294958080 }
  0x4e   : > { %2296 = dma.done.wait (%p2744_p6), [#allocation8], 6144   ;;  %p2745_p9 = pmov %p2742_p1 }
  0x4f   : > { %s173_s27 = sand.u32 1, %s2313_s13   ;;  %p2746_p13 = scmp.ne.s32.totalorder %s2375_s16, 0 }
  0x50   : > { %2298 = vsyncadd (%p2745_p9), [#allocation8], 4294961152  ;;  %s1993_s29 = smul.u32 384, %s173_s27  ;;  %v183_v0 = vld [vmem:[#allocation7] sm:$0xff] (!%p2746_p13)  ;;  %v184_v1 = vld [vmem:[#allocation7 + $0x8] sm:$0xff] (!%p2746_p13) }
  0x51   : > { %182 = sbr.rel (%p2746_p13) target bundleno = 118 (0x76), region = 40  ;;  %v185_v2 = vld [vmem:[#allocation7 + $0x10] sm:$0xff] (!%p2746_p13)  ;;  %v231_v3 = vpack.c.bf16 (!%p2746_p13), %v184_v1, %v183_v0  ;;  %v186_v4 = vld [vmem:[#allocation7 + $0x18] sm:$0xff] (!%p2746_p13)  ;;  %v187_v5 = vld [vmem:[#allocation7 + $0x20] sm:$0xff] (!%p2746_p13)  ;;  %327 = vst [vmem:[#allocation3] sm:$0xff] (!%p2746_p13), %v183_v0 }
  0x52   : > { %s2480_s17 = scalar_lea.vmem [#allocation9], %s1993_s29  ;;  %v188_v6 = vld [vmem:[#allocation7 + $0x28] sm:$0xff] (!%p2746_p13)  ;;  %328 = vst [vmem:[#allocation3 + $0x8] sm:$0xff] (!%p2746_p13), %v184_v1  ;;  %329 = vst [vmem:[#allocation3 + $0x10] sm:$0xff] (!%p2746_p13), %v185_v2  ;;  %v232_v7 = vpack.c.bf16 (!%p2746_p13), %v186_v4, %v185_v2  ;;  %v189_v9 = vld [vmem:[#allocation7 + $0x30] sm:$0xff] (!%p2746_p13) }
  0x53   : > { %v233_v8 = vpack.c.bf16 (!%p2746_p13), %v188_v6, %v187_v5  ;;  %v190_v10 = vld [vmem:[#allocation7 + $0x38] sm:$0xff] (!%p2746_p13)  ;;  %v191_v11 = vld [vmem:[#allocation7 + $0x40] sm:$0xff] (!%p2746_p13)  ;;  %330 = vst [vmem:[#allocation3 + $0x18] sm:$0xff] (!%p2746_p13), %v186_v4  ;;  %331 = vst [vmem:[#allocation3 + $0x20] sm:$0xff] (!%p2746_p13), %v187_v5 }
  0x54   : > { %332 = vst [vmem:[#allocation3 + $0x28] sm:$0xff] (!%p2746_p13), %v188_v6  ;;  %255 = vst [vmem:[#allocation2] sm:$0xff] (!%p2746_p13), %v231_v3  ;;  %v234_v12 = vpack.c.bf16 (!%p2746_p13), %v190_v10, %v189_v9  ;;  %v192_v13 = vld [vmem:[#allocation7 + $0x48] sm:$0xff] (!%p2746_p13)  ;;  %v193_v14 = vld [vmem:[#allocation7 + $0x50] sm:$0xff] (!%p2746_p13) }
  0x55   : > { %v194_v15 = vld [vmem:[#allocation7 + $0x58] sm:$0xff] (!%p2746_p13)  ;;  %333 = vst [vmem:[#allocation3 + $0x30] sm:$0xff] (!%p2746_p13), %v189_v9  ;;  %334 = vst [vmem:[#allocation3 + $0x38] sm:$0xff] (!%p2746_p13), %v190_v10  ;;  %v235_v16 = vpack.c.bf16 (!%p2746_p13), %v192_v13, %v191_v11  ;;  %v195_v18 = vld [vmem:[#allocation7 + $0x60] sm:$0xff] (!%p2746_p13) }
  0x56   : > { %335 = vst [vmem:[#allocation3 + $0x40] sm:$0xff] (!%p2746_p13), %v191_v11  ;;  %256 = vst [vmem:[#allocation2 + $0x8] sm:$0xff] (!%p2746_p13), %v232_v7  ;;  %v236_v17 = vpack.c.bf16 (!%p2746_p13), %v194_v15, %v193_v14  ;;  %v196_v19 = vld [vmem:[#allocation7 + $0x68] sm:$0xff] (!%p2746_p13)  ;;  %v197_v20 = vld [vmem:[#allocation7 + $0x70] sm:$0xff] (!%p2746_p13) }
  0x57   : > { %257 = vst [vmem:[#allocation2 + $0x10] sm:$0xff] (!%p2746_p13), %v233_v8  ;;  %336 = vst [vmem:[#allocation3 + $0x48] sm:$0xff] (!%p2746_p13), %v192_v13  ;;  %v237_v21 = vpack.c.bf16 (!%p2746_p13), %v196_v19, %v195_v18  ;;  %v198_v22 = vld [vmem:[#allocation7 + $0x78] sm:$0xff] (!%p2746_p13)  ;;  %v199_v23 = vld [vmem:[#allocation7 + $0x80] sm:$0xff] (!%p2746_p13) }
  0x58   : > { %337 = vst [vmem:[#allocation3 + $0x50] sm:$0xff] %v193_v14  ;;  %338 = vst [vmem:[#allocation3 + $0x58] sm:$0xff] %v194_v15  ;;  %v200_v24 = vld [vmem:[#allocation7 + $0x88] sm:$0xff]  ;;  %v238_v25 = vpack.c.bf16 %v198_v22, %v197_v20  ;;  %v201_v27 = vld [vmem:[#allocation7 + $0x90] sm:$0xff] }
  0x59   : > { %258 = vst [vmem:[#allocation2 + $0x18] sm:$0xff] %v234_v12  ;;  %339 = vst [vmem:[#allocation3 + $0x60] sm:$0xff] %v195_v18  ;;  %v239_v26 = vpack.c.bf16 %v200_v24, %v199_v23  ;;  %v202_v28 = vld [vmem:[#allocation7 + $0x98] sm:$0xff]  ;;  %v203_v29 = vld [vmem:[#allocation7 + $0xa0] sm:$0xff] }
  0x5a   : > { %340 = vst [vmem:[#allocation3 + $0x68] sm:$0xff] %v196_v19  ;;  %341 = vst [vmem:[#allocation3 + $0x70] sm:$0xff] %v197_v20  ;;  %v240_v30 = vpack.c.bf16 %v202_v28, %v201_v27  ;;  %v204_v31 = vld [vmem:[#allocation7 + $0xa8] sm:$0xff]  ;;  %v205_v32 = vld [vmem:[#allocation7 + $0xb0] sm:$0xff] }
  0x5b   : > { %259 = vst [vmem:[#allocation2 + $0x20] sm:$0xff] %v235_v16  ;;  %260 = vst [vmem:[#allocation2 + $0x28] sm:$0xff] %v236_v17  ;;  %v206_v33 = vld [vmem:[#allocation7 + $0xb8] sm:$0xff]  ;;  %v241_v34 = vpack.c.bf16 %v204_v31, %v203_v29  ;;  %v207_v36 = vld [vmem:[#allocation7 + $0xc0] sm:$0xff] }
  0x5c   : > { %342 = vst [vmem:[#allocation3 + $0x78] sm:$0xff] %v198_v22  ;;  %343 = vst [vmem:[#allocation3 + $0x80] sm:$0xff] %v199_v23  ;;  %v242_v35 = vpack.c.bf16 %v206_v33, %v205_v32  ;;  %v208_v37 = vld [vmem:[#allocation7 + $0xc8] sm:$0xff]  ;;  %v209_v38 = vld [vmem:[#allocation7 + $0xd0] sm:$0xff] }
  0x5d   : > { %344 = vst [vmem:[#allocation3 + $0x88] sm:$0xff] %v200_v24  ;;  %261 = vst [vmem:[#allocation2 + $0x30] sm:$0xff] %v237_v21  ;;  %v243_v39 = vpack.c.bf16 %v208_v37, %v207_v36  ;;  %v210_v40 = vld [vmem:[#allocation7 + $0xd8] sm:$0xff]  ;;  %v211_v41 = vld [vmem:[#allocation7 + $0xe0] sm:$0xff] }
  0x5e   : > { %345 = vst [vmem:[#allocation3 + $0x90] sm:$0xff] %v201_v27  ;;  %346 = vst [vmem:[#allocation3 + $0x98] sm:$0xff] %v202_v28  ;;  %v212_v42 = vld [vmem:[#allocation7 + $0xe8] sm:$0xff]  ;;  %v244_v43 = vpack.c.bf16 %v210_v40, %v209_v38  ;;  %v213_v45 = vld [vmem:[#allocation7 + $0xf0] sm:$0xff] }
  0x5f   : > { %347 = vst [vmem:[#allocation3 + $0xa0] sm:$0xff] %v203_v29  ;;  %262 = vst [vmem:[#allocation2 + $0x38] sm:$0xff] %v238_v25  ;;  %v245_v44 = vpack.c.bf16 %v212_v42, %v211_v41  ;;  %v214_v46 = vld [vmem:[#allocation7 + $0xf8] sm:$0xff]  ;;  %v215_v47 = vld [vmem:[#allocation7 + $0x100] sm:$0xff] }
  0x60   : > { %263 = vst [vmem:[#allocation2 + $0x40] sm:$0xff] %v239_v26  ;;  %348 = vst [vmem:[#allocation3 + $0xa8] sm:$0xff] %v204_v31  ;;  %v246_v48 = vpack.c.bf16 %v214_v46, %v213_v45  ;;  %v216_v49 = vld [vmem:[#allocation7 + $0x108] sm:$0xff]  ;;  %v217_v50 = vld [vmem:[#allocation7 + $0x110] sm:$0xff] }
  0x61   : > { %349 = vst [vmem:[#allocation3 + $0xb0] sm:$0xff] %v205_v32  ;;  %350 = vst [vmem:[#allocation3 + $0xb8] sm:$0xff] %v206_v33  ;;  %v218_v51 = vld [vmem:[#allocation7 + $0x118] sm:$0xff]  ;;  %v247_v52 = vpack.c.bf16 %v216_v49, %v215_v47  ;;  %v219_v54 = vld [vmem:[#allocation7 + $0x120] sm:$0xff] }
  0x62   : > { %264 = vst [vmem:[#allocation2 + $0x48] sm:$0xff] %v240_v30  ;;  %351 = vst [vmem:[#allocation3 + $0xc0] sm:$0xff] %v207_v36  ;;  %v248_v53 = vpack.c.bf16 %v218_v51, %v217_v50  ;;  %v220_v55 = vld [vmem:[#allocation7 + $0x128] sm:$0xff]  ;;  %v221_v56 = vld [vmem:[#allocation7 + $0x130] sm:$0xff] }
  0x63   : > { %352 = vst [vmem:[#allocation3 + $0xc8] sm:$0xff] %v208_v37  ;;  %353 = vst [vmem:[#allocation3 + $0xd0] sm:$0xff] %v209_v38  ;;  %v249_v57 = vpack.c.bf16 %v220_v55, %v219_v54  ;;  %v222_v58 = vld [vmem:[#allocation7 + $0x138] sm:$0xff]  ;;  %v223_v59 = vld [vmem:[#allocation7 + $0x140] sm:$0xff] }
  0x64   : > { %265 = vst [vmem:[#allocation2 + $0x50] sm:$0xff] %v241_v34  ;;  %266 = vst [vmem:[#allocation2 + $0x58] sm:$0xff] %v242_v35  ;;  %v224_v60 = vld [vmem:[#allocation7 + $0x148] sm:$0xff]  ;;  %v250_v61 = vpack.c.bf16 %v222_v58, %v221_v56  ;;  %v225_v63 = vld [vmem:[#allocation7 + $0x150] sm:$0xff] }
  0x65   : > { %354 = vst [vmem:[#allocation3 + $0xd8] sm:$0xff] %v210_v40  ;;  %355 = vst [vmem:[#allocation3 + $0xe0] sm:$0xff] %v211_v41  ;;  %v251_v62 = vpack.c.bf16 %v224_v60, %v223_v59  ;;  %v226_v0 = vld [vmem:[#allocation7 + $0x158] sm:$0xff]  ;;  %v227_v1 = vld [vmem:[#allocation7 + $0x160] sm:$0xff] }
  0x66   : > { %356 = vst [vmem:[#allocation3 + $0xe8] sm:$0xff] %v212_v42  ;;  %267 = vst [vmem:[#allocation2 + $0x60] sm:$0xff] %v243_v39  ;;  %v252_v2 = vpack.c.bf16 %v226_v0, %v225_v63  ;;  %v228_v3 = vld [vmem:[#allocation7 + $0x168] sm:$0xff]  ;;  %v229_v4 = vld [vmem:[#allocation7 + $0x170] sm:$0xff] }
  0x67   : > { %357 = vst [vmem:[#allocation3 + $0xf0] sm:$0xff] %v213_v45  ;;  %358 = vst [vmem:[#allocation3 + $0xf8] sm:$0xff] %v214_v46  ;;  %v230_v5 = vld [vmem:[#allocation7 + $0x178] sm:$0xff]  ;;  %v253_v6 = vpack.c.bf16 %v228_v3, %v227_v1 }
  0x68   : > { %359 = vst [vmem:[#allocation3 + $0x100] sm:$0xff] %v215_v47  ;;  %268 = vst [vmem:[#allocation2 + $0x68] sm:$0xff] %v244_v43  ;;  %v254_v7 = vpack.c.bf16 %v230_v5, %v229_v4 }
  0x69   : > { %269 = vst [vmem:[#allocation2 + $0x70] sm:$0xff] %v245_v44  ;;  %360 = vst [vmem:[#allocation3 + $0x108] sm:$0xff] %v216_v49 }
  0x6a   : > { %361 = vst [vmem:[#allocation3 + $0x110] sm:$0xff] %v217_v50  ;;  %362 = vst [vmem:[#allocation3 + $0x118] sm:$0xff] %v218_v51 }
  0x6b   : > { %270 = vst [vmem:[#allocation2 + $0x78] sm:$0xff] %v246_v48  ;;  %363 = vst [vmem:[#allocation3 + $0x120] sm:$0xff] %v219_v54 }
  0x6c   : > { %364 = vst [vmem:[#allocation3 + $0x128] sm:$0xff] %v220_v55  ;;  %365 = vst [vmem:[#allocation3 + $0x130] sm:$0xff] %v221_v56 }
  0x6d   : > { %271 = vst [vmem:[#allocation2 + $0x80] sm:$0xff] %v247_v52  ;;  %272 = vst [vmem:[#allocation2 + $0x88] sm:$0xff] %v248_v53 }
  0x6e   : > { %366 = vst [vmem:[#allocation3 + $0x138] sm:$0xff] %v222_v58  ;;  %367 = vst [vmem:[#allocation3 + $0x140] sm:$0xff] %v223_v59 }
  0x6f   : > { %368 = vst [vmem:[#allocation3 + $0x148] sm:$0xff] %v224_v60  ;;  %273 = vst [vmem:[#allocation2 + $0x90] sm:$0xff] %v249_v57 }
  0x70   : > { %369 = vst [vmem:[#allocation3 + $0x150] sm:$0xff] %v225_v63  ;;  %370 = vst [vmem:[#allocation3 + $0x158] sm:$0xff] %v226_v0 }
  0x71   : > { %371 = vst [vmem:[#allocation3 + $0x160] sm:$0xff] %v227_v1  ;;  %274 = vst [vmem:[#allocation2 + $0x98] sm:$0xff] %v250_v61 }
  0x72   : > { %275 = vst [vmem:[#allocation2 + $0xa0] sm:$0xff] %v251_v62  ;;  %372 = vst [vmem:[#allocation3 + $0x168] sm:$0xff] %v228_v3 }
  0x73   : > { %373 = vst [vmem:[#allocation3 + $0x170] sm:$0xff] %v229_v4  ;;  %374 = vst [vmem:[#allocation3 + $0x178] sm:$0xff] %v230_v5 }
  0x74   : > { %276 = vst [vmem:[#allocation2 + $0xa8] sm:$0xff] %v252_v2  ;;  %277 = vst [vmem:[#allocation2 + $0xb0] sm:$0xff] %v253_v6 }
  0x75   : > { %278 = vst [vmem:[#allocation2 + $0xb8] sm:$0xff] %v254_v7 }
  0x76 PF: > { %v2329_v9 = vmov 0   ;;  %v2071_v11 = vld [vmem:[#allocation4 + $0x4] ss:$12 sps:$4 sm:$0xff]   ;;  %v2074_v13 = vld [vmem:[#allocation4 + $0x1b4] ss:$12 sps:$4 sm:$0xff]   ;;  %v474_v14 = vld [vmem:[#allocation2 + $0x18] sm:$0xff] }
  0x77   : > { %879 = vmatprep.subr.bf16.mxu0 %v2329_v9  ;;  %1961 = vmatprep.subr.bf16.mxu1 %v2329_v9  ;;  %v475_v15 = vld [vmem:[#allocation2 + $0x20] sm:$0xff]  ;;  %v476_v16 = vld [vmem:[#allocation2 + $0x28] sm:$0xff]  ;;  %v477_v17 = vld [vmem:[#allocation2 + $0x30] sm:$0xff]  ;;  %p1859_p10 = scmp.ne.s32.totalorder %s2375_s16, 1 }
  0x78   : > { %911 = vmatprep.mubr.bf16.mxu0 %v2071_v11  ;;  %1055 = vmatprep.mubr.bf16.mxu1 %v2074_v13  ;;  %v478_v18 = vld [vmem:[#allocation2 + $0x38] sm:$0xff]  ;;  %v479_v19 = vld [vmem:[#allocation2 + $0x40] sm:$0xff]  ;;  %v480_v20 = vld [vmem:[#allocation2 + $0x48] sm:$0xff] }
  0x79   : > { %v471_v8 = vld [vmem:[#allocation2] sm:$0xff]  ;;  %v481_v21 = vld [vmem:[#allocation2 + $0x50] sm:$0xff]  ;;  %v482_v22 = vld [vmem:[#allocation2 + $0x58] sm:$0xff] }
  0x7a   : > { %880 = vmatpush1.bf16.msra.mxu0 %v471_v8  ;;  %1977 = vmatpush1.bf16.msra.mxu1 %v471_v8  ;;  %v483_v23 = vld [vmem:[#allocation2 + $0x60] sm:$0xff]  ;;  %v484_v24 = vld [vmem:[#allocation2 + $0x68] sm:$0xff]  ;;  %v485_v25 = vld [vmem:[#allocation2 + $0x70] sm:$0xff] }
  0x7b   : > { %881 = vmatprep.subr.bf16.mxu0 %v2329_v9  ;;  %1962 = vmatprep.subr.bf16.mxu1 %v2329_v9  ;;  %v472_v10 = vld [vmem:[#allocation2 + $0x8] sm:$0xff]  ;;  %v486_v26 = vld [vmem:[#allocation2 + $0x78] sm:$0xff]  ;;  %v487_v29 = vld [vmem:[#allocation2 + $0x80] sm:$0xff] }
  0x7c   : > { %v473_v12 = vld [vmem:[#allocation2 + $0x10] sm:$0xff]  ;;  %v2069_v27 = vld [vmem:[#allocation4] ss:$12 sps:$4 sm:$0xff]   ;;  %v2075_v30 = vld [vmem:[#allocation4 + $0x1c] ss:$12 sps:$4 sm:$0xff]  }
  0x7d   : > { %v2072_v28 = vld [vmem:[#allocation4 + $0x1b0] ss:$12 sps:$4 sm:$0xff]   ;;  %v2077_v31 = vld [vmem:[#allocation4 + $0x1cc] ss:$12 sps:$4 sm:$0xff]   ;;  %v2080_v35 = vld [vmem:[#allocation4 + $0x1c8] ss:$12 sps:$4 sm:$0xff]  }
  0x7e   : > { %882 = vmatpush1.bf16.msra.mxu0 %v472_v10  ;;  %1978 = vmatpush1.bf16.msra.mxu1 %v472_v10  ;;  %v488_v32 = vld [vmem:[#allocation2 + $0x88] sm:$0xff]  ;;  %v489_v33 = vld [vmem:[#allocation2 + $0x90] sm:$0xff]  ;;  %v2079_v34 = vld [vmem:[#allocation4 + $0x18] ss:$12 sps:$4 sm:$0xff]  }
  0x7f   : > { %883 = vmatprep.subr.bf16.mxu0 %v2329_v9  ;;  %1963 = vmatprep.subr.bf16.mxu1 %v2329_v9  ;;  %v2081_v36 = vld [vmem:[#allocation4 + $0x34] ss:$12 sps:$4 sm:$0xff]   ;;  %v2083_v37 = vld [vmem:[#allocation4 + $0x1e4] ss:$12 sps:$4 sm:$0xff]   ;;  %v490_v38 = vld [vmem:[#allocation2 + $0x98] sm:$0xff] }
  0x80   : > { %v491_v39 = vld [vmem:[#allocation2 + $0xa0] sm:$0xff]  ;;  %v2085_v40 = vld [vmem:[#allocation4 + $0x30] ss:$12 sps:$4 sm:$0xff]   ;;  %v2087_v42 = vld [vmem:[#allocation4 + $0x4c] ss:$12 sps:$4 sm:$0xff]  }
  0x81   : > { %v2086_v41 = vld [vmem:[#allocation4 + $0x1e0] ss:$12 sps:$4 sm:$0xff]   ;;  %v2089_v43 = vld [vmem:[#allocation4 + $0x1fc] ss:$12 sps:$4 sm:$0xff]   ;;  %v2092_v46 = vld [vmem:[#allocation4 + $0x1f8] ss:$12 sps:$4 sm:$0xff]  }
  0x82   : > { %884 = vmatpush1.bf16.msra.mxu0 %v473_v12  ;;  %1979 = vmatpush1.bf16.msra.mxu1 %v473_v12  ;;  %v492_v44 = vld [vmem:[#allocation2 + $0xa8] sm:$0xff]  ;;  %v493_v47 = vld [vmem:[#allocation2 + $0xb0] sm:$0xff]  ;;  %v494_v50 = vld [vmem:[#allocation2 + $0xb8] sm:$0xff] }
  0x83   : > { %885 = vmatprep.subr.bf16.mxu0 %v2329_v9  ;;  %1964 = vmatprep.subr.bf16.mxu1 %v2329_v9  ;;  %v2091_v45 = vld [vmem:[#allocation4 + $0x48] ss:$12 sps:$4 sm:$0xff]   ;;  %v2093_v48 = vld [vmem:[#allocation4 + $0x64] ss:$12 sps:$4 sm:$0xff]   ;;  %v2097_v51 = vld [vmem:[#allocation4 + $0x60] ss:$12 sps:$4 sm:$0xff]  }
  0x84   : > { %v2095_v49 = vld [vmem:[#allocation4 + $0x214] ss:$12 sps:$4 sm:$0xff]   ;;  %v2098_v52 = vld [vmem:[#allocation4 + $0x210] ss:$12 sps:$4 sm:$0xff]   ;;  %v2101_v54 = vld [vmem:[#allocation4 + $0x22c] ss:$12 sps:$4 sm:$0xff]  }
  0x85   : > { %v2099_v53 = vld [vmem:[#allocation4 + $0x7c] ss:$12 sps:$4 sm:$0xff]   ;;  %v2103_v55 = vld [vmem:[#allocation4 + $0x78] ss:$12 sps:$4 sm:$0xff]   ;;  %v2105_v57 = vld [vmem:[#allocation4 + $0x94] ss:$12 sps:$4 sm:$0xff]  }
  0x86   : > { %886 = vmatpush1.bf16.msra.mxu0 %v474_v14  ;;  %1980 = vmatpush1.bf16.msra.mxu1 %v474_v14  ;;  %v2104_v56 = vld [vmem:[#allocation4 + $0x228] ss:$12 sps:$4 sm:$0xff]   ;;  %v2108_v59 = vld [vmem:[#allocation4 + $0x90] ss:$12 sps:$4 sm:$0xff]   ;;  %v2109_v60 = vld [vmem:[#allocation4 + $0x20] ss:$12 sps:$4 sm:$0xff]  }
  0x87   : > { %887 = vmatprep.subr.bf16.mxu0 %v2329_v9  ;;  %1965 = vmatprep.subr.bf16.mxu1 %v2329_v9  ;;  %v2107_v58 = vld [vmem:[#allocation4 + $0x8] ss:$12 sps:$4 sm:$0xff]   ;;  %v2110_v61 = vld [vmem:[#allocation4 + $0xac] ss:$12 sps:$4 sm:$0xff]   ;;  %v2114_v0 = vld [vmem:[#allocation4 + $0x50] ss:$12 sps:$4 sm:$0xff]  }
  0x88   : > { %v2112_v62 = vld [vmem:[#allocation4 + $0x38] ss:$12 sps:$4 sm:$0xff]   ;;  %v2113_v63 = vld [vmem:[#allocation4 + $0xa8] ss:$12 sps:$4 sm:$0xff]   ;;  %v2118_v3 = vld [vmem:[#allocation4 + $0xc0] ss:$12 sps:$4 sm:$0xff]  }
  0x89   : > { %v2115_v1 = vld [vmem:[#allocation4 + $0xc4] ss:$12 sps:$4 sm:$0xff]   ;;  %v2117_v2 = vld [vmem:[#allocation4 + $0x68] ss:$12 sps:$4 sm:$0xff]   ;;  %v2119_v4 = vld [vmem:[#allocation4 + $0x80] ss:$12 sps:$4 sm:$0xff]  }
  0x8a   : > { %888 = vmatpush1.bf16.msra.mxu0 %v475_v15  ;;  %1981 = vmatpush1.bf16.msra.mxu1 %v475_v15  ;;  %v2120_v5 = vld [vmem:[#allocation4 + $0xdc] ss:$12 sps:$4 sm:$0xff]   ;;  %v2122_v6 = vld [vmem:[#allocation4 + $0x98] ss:$12 sps:$4 sm:$0xff]   ;;  %v2129_v12 = vld [vmem:[#allocation4 + $0xe0] ss:$12 sps:$4 sm:$0xff]  }
  0x8b   : > { %889 = vmatprep.subr.bf16.mxu0 %v2329_v9  ;;  %1966 = vmatprep.subr.bf16.mxu1 %v2329_v9  ;;  %v2123_v7 = vld [vmem:[#allocation4 + $0xd8] ss:$12 sps:$4 sm:$0xff]   ;;  %v2124_v8 = vld [vmem:[#allocation4 + $0xb0] ss:$12 sps:$4 sm:$0xff]   ;;  %v2127_v10 = vld [vmem:[#allocation4 + $0xc8] ss:$12 sps:$4 sm:$0xff]  }
  0x8c   : > { %v2128_v11 = vld [vmem:[#allocation4 + $0xf0] ss:$12 sps:$4 sm:$0xff]   ;;  %v2130_v13 = vld [vmem:[#allocation4 + $0x10c] ss:$12 sps:$4 sm:$0xff]   ;;  %v2133_v15 = vld [vmem:[#allocation4 + $0x108] ss:$12 sps:$4 sm:$0xff]  }
  0x8d   : > { %v2132_v14 = vld [vmem:[#allocation4 + $0xf8] ss:$12 sps:$4 sm:$0xff]  }
  0x8e   : > { %890 = vmatpush1.bf16.msra.mxu0 %v476_v16  ;;  %1982 = vmatpush1.bf16.msra.mxu1 %v476_v16  ;;  %v2134_v16 = vld [vmem:[#allocation4 + $0x110] ss:$12 sps:$4 sm:$0xff]  }
  0x8f   : > { %891 = vmatprep.subr.bf16.mxu0 %v2329_v9  ;;  %1967 = vmatprep.subr.bf16.mxu1 %v2329_v9 }
  0x92   : > { %892 = vmatpush1.bf16.msra.mxu0 %v477_v17  ;;  %1983 = vmatpush1.bf16.msra.mxu1 %v477_v17  ;;  %v2135_v17 = vld [vmem:[#allocation4 + $0x124] ss:$12 sps:$4 sm:$0xff]  }
  0x93   : > { %893 = vmatprep.subr.bf16.mxu0 %v2329_v9  ;;  %1968 = vmatprep.subr.bf16.mxu1 %v2329_v9 }
  0x96   : > { %894 = vmatpush1.bf16.msra.mxu0 %v478_v18  ;;  %1984 = vmatpush1.bf16.msra.mxu1 %v478_v18  ;;  %v2137_v18 = vld [vmem:[#allocation4 + $0x128] ss:$12 sps:$4 sm:$0xff]  }
  0x97   : > { %895 = vmatprep.subr.bf16.mxu0 %v2329_v9  ;;  %1969 = vmatprep.subr.bf16.mxu1 %v2329_v9 }
  0x9a   : > { %896 = vmatpush1.bf16.msra.mxu0 %v479_v19  ;;  %1985 = vmatpush1.bf16.msra.mxu1 %v479_v19  ;;  %v2138_v19 = vld [vmem:[#allocation4 + $0x120] ss:$12 sps:$4 sm:$0xff]  }
  0x9b   : > { %897 = vmatprep.subr.bf16.mxu0 %v2329_v9  ;;  %1970 = vmatprep.subr.bf16.mxu1 %v2329_v9 }
  0x9e   : > { %898 = vmatpush1.bf16.msra.mxu0 %v480_v20  ;;  %1986 = vmatpush1.bf16.msra.mxu1 %v480_v20  ;;  %v2139_v20 = vld [vmem:[#allocation4 + $0x140] ss:$12 sps:$4 sm:$0xff]  }
  0x9f   : > { %899 = vmatprep.subr.bf16.mxu0 %v2329_v9  ;;  %1971 = vmatprep.subr.bf16.mxu1 %v2329_v9 }
  0xa2   : > { %900 = vmatpush1.bf16.msra.mxu0 %v481_v21  ;;  %1987 = vmatpush1.bf16.msra.mxu1 %v481_v21  ;;  %v2140_v21 = vld [vmem:[#allocation4 + $0x13c] ss:$12 sps:$4 sm:$0xff]  }
  0xa3   : > { %901 = vmatprep.subr.bf16.mxu0 %v2329_v9  ;;  %1972 = vmatprep.subr.bf16.mxu1 %v2329_v9 }
  0xa6   : > { %902 = vmatpush1.bf16.msra.mxu0 %v482_v22  ;;  %1988 = vmatpush1.bf16.msra.mxu1 %v482_v22  ;;  %v2142_v22 = vld [vmem:[#allocation4 + $0x158] ss:$12 sps:$4 sm:$0xff]  }
  0xa7   : > { %903 = vmatprep.subr.bf16.mxu0 %v2329_v9  ;;  %1973 = vmatprep.subr.bf16.mxu1 %v2329_v9 }
  0xaa   : > { %904 = vmatpush1.bf16.msra.mxu0 %v483_v23  ;;  %1989 = vmatpush1.bf16.msra.mxu1 %v483_v23  ;;  %v2143_v23 = vld [vmem:[#allocation4 + $0x138] ss:$12 sps:$4 sm:$0xff]  }
  0xab   : > { %905 = vmatprep.subr.bf16.mxu0 %v2329_v9  ;;  %1974 = vmatprep.subr.bf16.mxu1 %v2329_v9 }
  0xae   : > { %906 = vmatpush1.bf16.msra.mxu0 %v484_v24  ;;  %1990 = vmatpush1.bf16.msra.mxu1 %v484_v24  ;;  %v2144_v24 = vld [vmem:[#allocation4 + $0x170] ss:$12 sps:$4 sm:$0xff]  }
  0xaf   : > { %907 = vmatprep.subr.bf16.mxu0 %v2329_v9  ;;  %1975 = vmatprep.subr.bf16.mxu1 %v2329_v9 }
  0xb2   : > { %908 = vmatpush1.bf16.msra.mxu0 %v485_v25  ;;  %1991 = vmatpush1.bf16.msra.mxu1 %v485_v25  ;;  %v2145_v25 = vld [vmem:[#allocation4 + $0x154] ss:$12 sps:$4 sm:$0xff]  }
  0xb3   : > { %909 = vmatprep.subr.bf16.mxu0 %v2329_v9  ;;  %1976 = vmatprep.subr.bf16.mxu1 %v2329_v9  ;;  %v2125_v9 = vld [vmem:[#allocation4 + $0xf4] ss:$12 sps:$4 sm:$0xff]  }
  0xb6   : > { %910 = vmatpush1.bf16.msra.mxu0 %v486_v26  ;;  %1992 = vmatpush1.bf16.msra.mxu1 %v486_v26  ;;  %v2147_v26 = vld [vmem:[#allocation4 + $0x188] ss:$12 sps:$4 sm:$0xff]  }
  0xb7   : > { %1897 = vmatprep.subr.bf16.mxu1 %v487_v29 }
  0xb9   : > { %912 = vmatmul.mubr.bf16.vlgmr.msra.gmra.mrb[0].mxu0 %v2069_v27  ;;  %1056 = vmatmul.mubr.bf16.vlgmr.msra.gmra.mrb[0].mxu1 %v2072_v28  ;;  %v2148_v27 = vld [vmem:[#allocation4 + $0x150] ss:$12 sps:$4 sm:$0xff]   ;;  %v2149_v28 = vld [vmem:[#allocation4 + $0x1a0] ss:$12 sps:$4 sm:$0xff]  }
  0xba   : > { %1898 = vmatpush3.bf16.msra.mxu1 %v487_v29  ;;  %919 = vmatprep.mubr.bf16.mxu0 %v2075_v30  ;;  %v2150_v29 = vld [vmem:[#allocation4 + $0x16c] ss:$12 sps:$4 sm:$0xff]  }
  0xbb   : > { %1899 = vmatprep.subr.bf16.mxu1 %v488_v32  ;;  %1063 = vmatprep.mubr.bf16.mxu1 %v2077_v31  ;;  %v2152_v30 = vld [vmem:[#allocation4 + $0x1b8] ss:$12 sps:$4 sm:$0xff]   ;;  %v2153_v31 = vld [vmem:[#allocation4 + $0x168] ss:$12 sps:$4 sm:$0xff]  }
  0xbe   : > { %1900 = vmatpush3.bf16.msra.mxu1 %v488_v32  ;;  %v2154_v32 = vld [vmem:[#allocation4 + $0x1d0] ss:$12 sps:$4 sm:$0xff]  }
  0xbf   : > { %1901 = vmatprep.subr.bf16.mxu1 %v489_v33 }
  0xc1   : > { %920 = vmatmul.mubr.bf16.gmra.mrb[4].mxu0 %v2079_v34  ;;  %1064 = vmatmul.mubr.bf16.gmra.mrb[4].mxu1 %v2080_v35  ;;  %v2157_v34 = vld [vmem:[#allocation4 + $0x1e8] ss:$12 sps:$4 sm:$0xff]   ;;  %v2158_v35 = vld [vmem:[#allocation4 + $0x180] ss:$12 sps:$4 sm:$0xff]  }
  0xc2   : > { %1902 = vmatpush3.bf16.msra.mxu1 %v489_v33  ;;  %927 = vmatprep.mubr.bf16.mxu0 %v2081_v36  ;;  %v2155_v33 = vld [vmem:[#allocation4 + $0x184] ss:$12 sps:$4 sm:$0xff]   ;;  %v2159_v36 = vld [vmem:[#allocation4 + $0x200] ss:$12 sps:$4 sm:$0xff]  }
  0xc3   : > { %1071 = vmatprep.mubr.bf16.mxu1 %v2083_v37  ;;  %1903 = vmatprep.subr.bf16.mxu1 %v490_v38  ;;  %v2160_v37 = vld [vmem:[#allocation4 + $0x19c] ss:$12 sps:$4 sm:$0xff]  }
  0xc6   : > { %1904 = vmatpush3.bf16.msra.mxu1 %v490_v38  ;;  %v2162_v38 = vld [vmem:[#allocation4 + $0x218] ss:$12 sps:$4 sm:$0xff]  }
  0xc7   : > { %1905 = vmatprep.subr.bf16.mxu1 %v491_v39 }
  0xc9   : > { %928 = vmatmul.mubr.bf16.gmra.mrb[8].mxu0 %v2085_v40  ;;  %1072 = vmatmul.mubr.bf16.gmra.mrb[8].mxu1 %v2086_v41  ;;  %v2164_v40 = vld [vmem:[#allocation4 + $0x230] ss:$12 sps:$4 sm:$0xff]  }
  0xca   : > { %935 = vmatprep.mubr.bf16.mxu0 %v2087_v42  ;;  %1079 = vmatprep.mubr.bf16.mxu1 %v2089_v43 }
  0xcb   : > { %1906 = vmatpush3.bf16.msra.mxu1 %v491_v39  ;;  %v2163_v39 = vld [vmem:[#allocation4 + $0x198] ss:$12 sps:$4 sm:$0xff]  }
  0xcc   : > { %1907 = vmatprep.subr.bf16.mxu1 %v492_v44 }
  0xcf   : > { %1908 = vmatpush3.bf16.msra.mxu1 %v492_v44 }
  0xd0   : > { %1909 = vmatprep.subr.bf16.mxu1 %v493_v47 }
  0xd1   : > { %936 = vmatmul.mubr.bf16.gmra.mrb[12].mxu0 %v2091_v45  ;;  %1080 = vmatmul.mubr.bf16.gmra.mrb[12].mxu1 %v2092_v46 }
  0xd2   : > { %943 = vmatprep.mubr.bf16.mxu0 %v2093_v48  ;;  %1087 = vmatprep.mubr.bf16.mxu1 %v2095_v49 }
  0xd3   : > { %1910 = vmatpush3.bf16.msra.mxu1 %v493_v47 }
  0xd4   : > { %1911 = vmatprep.subr.bf16.mxu1 %v494_v50 }
  0xd7   : > { %1912 = vmatpush3.bf16.msra.mxu1 %v494_v50 }
  0xd9   : > { %944 = vmatmul.mubr.bf16.gmra.mrb[16].mxu0 %v2097_v51  ;;  %1088 = vmatmul.mubr.bf16.gmra.mrb[16].mxu1 %v2098_v52 }
  0xda   : > { %951 = vmatprep.mubr.bf16.mxu0 %v2099_v53  ;;  %1095 = vmatprep.mubr.bf16.mxu1 %v2101_v54 }
  0xe1   : > { %952 = vmatmul.mubr.bf16.gmra.mrb[20].mxu0 %v2103_v55  ;;  %1096 = vmatmul.mubr.bf16.gmra.mrb[20].mxu1 %v2104_v56 }
  0xe2   : > { %959 = vmatprep.mubr.bf16.mxu0 %v2105_v57  ;;  %1913 = vmatprep.mubr.bf16.mxu1 %v2107_v58 }
  0xe9   : > { %960 = vmatmul.mubr.bf16.gmra.mrb[24].mxu0 %v2108_v59  ;;  %1914 = vmatmul.mubr.bf16.vlgmr.msra.gmra.mrb[24].mxu1 %v2109_v60 }
  0xea   : > { %967 = vmatprep.mubr.bf16.mxu0 %v2110_v61  ;;  %1917 = vmatprep.mubr.bf16.mxu1 %v2112_v62 }
  0xf1   : > { %968 = vmatmul.mubr.bf16.gmra.mrb[28].mxu0 %v2113_v63  ;;  %1918 = vmatmul.mubr.bf16.gmra.mrb[28].mxu1 %v2114_v0 }
  0xf2   : > { %975 = vmatprep.mubr.bf16.mxu0 %v2115_v1  ;;  %1921 = vmatprep.mubr.bf16.mxu1 %v2117_v2 }
  0xf9   : > { %976 = vmatmul.mubr.bf16.gmra.mrb[32].mxu0 %v2118_v3  ;;  %1922 = vmatmul.mubr.bf16.gmra.mrb[32].mxu1 %v2119_v4 }
  0xfa   : > { %983 = vmatprep.mubr.bf16.mxu0 %v2120_v5  ;;  %1925 = vmatprep.mubr.bf16.mxu1 %v2122_v6 }
 0x101   : > { %984 = vmatmul.mubr.bf16.gmra.mrb[36].mxu0 %v2123_v7  ;;  %1926 = vmatmul.mubr.bf16.gmra.mrb[36].mxu1 %v2124_v8 }
 0x102   : > { %991 = vmatprep.mubr.bf16.mxu0 %v2125_v9  ;;  %1929 = vmatprep.mubr.bf16.mxu1 %v2127_v10 }
 0x109   : > { %992 = vmatmul.mubr.bf16.gmra.mrb[40].mxu0 %v2128_v11  ;;  %1930 = vmatmul.mubr.bf16.gmra.mrb[40].mxu1 %v2129_v12 }
 0x10a   : > { %999 = vmatprep.mubr.bf16.mxu0 %v2130_v13  ;;  %1933 = vmatprep.mubr.bf16.mxu1 %v2132_v14 }
 0x111   : > { %1000 = vmatmul.mubr.bf16.gmra.mrb[44].mxu0 %v2133_v15  ;;  %1934 = vmatmul.mubr.bf16.gmra.mrb[44].mxu1 %v2134_v16 }
 0x112   : > { %1007 = vmatprep.mubr.bf16.mxu0 %v2135_v17  ;;  %1937 = vmatprep.mubr.bf16.mxu1 %v2137_v18 }
 0x119   : > { %1008 = vmatmul.mubr.bf16.gmra.mrb[48].mxu0 %v2138_v19  ;;  %1938 = vmatmul.mubr.bf16.gmra.mrb[48].mxu1 %v2139_v20 }
 0x11a   : > { %1015 = vmatprep.mubr.bf16.mxu0 %v2140_v21  ;;  %1941 = vmatprep.mubr.bf16.mxu1 %v2142_v22 }
 0x121   : > { %1016 = vmatmul.mubr.bf16.gmra.mrb[52].mxu0 %v2143_v23  ;;  %1942 = vmatmul.mubr.bf16.gmra.mrb[52].mxu1 %v2144_v24 }
 0x122   : > { %1023 = vmatprep.mubr.bf16.mxu0 %v2145_v25  ;;  %1945 = vmatprep.mubr.bf16.mxu1 %v2147_v26 }
 0x129   : > { %1024 = vmatmul.mubr.bf16.gmra.mrb[56].mxu0 %v2148_v27  ;;  %1946 = vmatmul.mubr.bf16.gmra.mrb[56].mxu1 %v2149_v28  ;;  %v1379_v27 = vld [vmem:[#allocation3 + $0x10] sm:$0xff] }
 0x12a   : > { %1031 = vmatprep.mubr.bf16.mxu0 %v2150_v29  ;;  %1949 = vmatprep.mubr.bf16.mxu1 %v2152_v30 }
 0x131   : > { %1032 = vmatmul.mubr.bf16.gmra.mrb[60].mxu0 %v2153_v31  ;;  %1950 = vmatmul.mubr.bf16.gmra.mrb[60].mxu1 %v2154_v32  ;;  %v1377_v31 = vld [vmem:[#allocation3] sm:$0xff] }
 0x132   : > { %1039 = vmatprep.mubr.bf16.mxu0 %v2155_v33  ;;  %1953 = vmatprep.mubr.bf16.mxu1 %v2157_v34 }
 0x139   : > { %1040 = vmatmul.mubr.bf16.gmra.mrb[64].mxu0 %v2158_v35  ;;  %1954 = vmatmul.mubr.bf16.gmra.mrb[64].mxu1 %v2159_v36  ;;  %v1380_v35 = vld [vmem:[#allocation3 + $0x18] sm:$0xff] }
 0x13a   : > { %1047 = vmatprep.mubr.bf16.mxu0 %v2160_v37  ;;  %1957 = vmatprep.mubr.bf16.mxu1 %v2162_v38 }
 0x141   : > { %1048 = vmatmul.mubr.bf16.gmra.mrb[68].mxu0 %v2163_v39  ;;  %1958 = vmatmul.mubr.bf16.gmra.mrb[68].mxu1 %v2164_v40  ;;  %v1378_v40 = vld [vmem:[#allocation3 + $0x8] sm:$0xff] }
 0x18c   : > { %v913_v41 = vpop.f32.mrb[0].mxu0  ;;  %v2516_v42 = vpop.f32.mrb[0].mxu1 }
 0x18d   : > { %v915_v43 = vpop.f32.mrb[1].mxu0  ;;  %v1059_v44 = vpop.f32.mrb[1].mxu1 }
 0x18e   : > { %v2518_v45 = vpop.f32.mrb[2].mxu0  ;;  %v2520_v46 = vpop.f32.mrb[2].mxu1 }
 0x18f   : > { %v918_v47 = vpop.f32.mrb[3].mxu0  ;;  %v1062_v48 = vpop.f32.mrb[3].mxu1 }
 0x194   : > { %v921_v49 = vpop.f32.mrb[4].mxu0  ;;  %v2522_v50 = vpop.f32.mrb[4].mxu1 }
 0x195   : > { %v923_v51 = vpop.f32.mrb[5].mxu0  ;;  %v1067_v52 = vpop.f32.mrb[5].mxu1 }
 0x196   : > { %v924_v53 = vpop.f32.mrb[6].mxu0  ;;  %v2524_v54 = vpop.f32.mrb[6].mxu1 }
 0x197   : > { %v926_v55 = vpop.f32.mrb[7].mxu0  ;;  %v1070_v56 = vpop.f32.mrb[7].mxu1 }
 0x19c   : > { %v2526_v57 = vpop.f32.mrb[8].mxu0  ;;  %v2528_v58 = vpop.f32.mrb[8].mxu1 }
 0x19d   : > { %v931_v59 = vpop.f32.mrb[9].mxu0  ;;  %v1075_v60 = vpop.f32.mrb[9].mxu1 }
 0x19e   : > { %v2530_v61 = vpop.f32.mrb[10].mxu0  ;;  %v2532_v62 = vpop.f32.mrb[10].mxu1  ;;  %v1381_v59 = vld [vmem:[#allocation3 + $0x20] sm:$0xff] }
 0x19f   : > { %v934_v63 = vpop.f32.mrb[11].mxu0  ;;  %v1078_v0 = vpop.f32.mrb[11].mxu1 }
 0x1a4   : > { %v937_v1 = vpop.f32.mrb[12].mxu0  ;;  %v2534_v2 = vpop.f32.mrb[12].mxu1 }
 0x1a5   : > { %v939_v3 = vpop.f32.mrb[13].mxu0  ;;  %v1083_v4 = vpop.f32.mrb[13].mxu1 }
 0x1a6   : > { %v2536_v5 = vpop.f32.mrb[14].mxu0  ;;  %v2538_v6 = vpop.f32.mrb[14].mxu1  ;;  %v1384_v3 = vld [vmem:[#allocation3 + $0x38] sm:$0xff] }
 0x1a7   : > { %v942_v7 = vpop.f32.mrb[15].mxu0  ;;  %v1086_v8 = vpop.f32.mrb[15].mxu1 }
 0x1ac   : > { %v2540_v9 = vpop.f32.mrb[16].mxu0  ;;  %v2542_v10 = vpop.f32.mrb[16].mxu1 }
 0x1ad   : > { %v947_v11 = vpop.f32.mrb[17].mxu0  ;;  %v1091_v12 = vpop.f32.mrb[17].mxu1 }
 0x1ae   : > { %v2544_v13 = vpop.f32.mrb[18].mxu0  ;;  %v2546_v14 = vpop.f32.mrb[18].mxu1  ;;  %v1382_v12 = vld [vmem:[#allocation3 + $0x28] sm:$0xff] }
 0x1af   : > { %v950_v15 = vpop.f32.mrb[19].mxu0  ;;  %v1094_v16 = vpop.f32.mrb[19].mxu1 }
 0x1b4   : > { %v2548_v17 = vpop.f32.mrb[20].mxu0  ;;  %v2550_v18 = vpop.f32.mrb[20].mxu1 }
 0x1b5   : > { %v955_v19 = vpop.f32.mrb[21].mxu0  ;;  %v1099_v20 = vpop.f32.mrb[21].mxu1 }
 0x1b6   : > { %v2552_v21 = vpop.f32.mrb[22].mxu0  ;;  %v2554_v22 = vpop.f32.mrb[22].mxu1 }
 0x1b7   : > { %v958_v23 = vpop.f32.mrb[23].mxu0  ;;  %v1102_v24 = vpop.f32.mrb[23].mxu1 }
 0x1b8   : > { %v1387_v24 = vld [vmem:[#allocation3 + $0x50] sm:$0xff] }
 0x1bc   : > { %v2556_v25 = vpop.f32.mrb[24].mxu0  ;;  %v1915_v26 = vpop.f32.mrb[24].mxu1 }
 0x1bd   : > { %v1147_v28 = vadd.f32 %v1915_v26, %v921_v49  ;;  %v963_v29 = vpop.f32.mrb[25].mxu0  ;;  %v1138_v30 = vpop.f32.mrb[25].mxu1 }
 0x1be   : > { %v1139_v32 = vadd.f32 %v1138_v30, %v913_v41  ;;  %v2558_v33 = vpop.f32.mrb[26].mxu0  ;;  %v1916_v34 = vpop.f32.mrb[26].mxu1 }
 0x1bf   : > { %1331 = vst [vmem:[%s2480_s17 + $0x10] sm:$0xff] %v1147_v28  ;;  %v1427_v36 = vadd.f32 %v1379_v27, %v1147_v28  ;;  %v1150_v37 = vadd.f32 %v1916_v34, %v924_v53  ;;  %v966_v38 = vpop.f32.mrb[27].mxu0  ;;  %v1141_v39 = vpop.f32.mrb[27].mxu1  ;;  %v1383_v53 = vld [vmem:[#allocation3 + $0x30] sm:$0xff] }
 0x1c0   : > { %1329 = vst [vmem:[%s2480_s17] sm:$0xff] %v1139_v32  ;;  %v1425_v43 = vadd.f32 %v1377_v31, %v1139_v32  ;;  %v1142_v44 = vadd.f32 %v1141_v39, %v2518_v45  ;;  %v1386_v38 = vld [vmem:[#allocation3 + $0x48] sm:$0xff] }
 0x1c1   : > { %1475 = vst [vmem:[#allocation3 + $0x10] sm:$0xff] %v1427_v36  ;;  %1332 = vst [vmem:[%s2480_s17 + $0x18] sm:$0xff] %v1150_v37  ;;  %v1428_v47 = vadd.f32 %v1380_v35, %v1150_v37  ;;  %v1522_v48 = vpack.c.bf16 %v1150_v37, %v1147_v28  ;;  %v1385_v28 = vld [vmem:[#allocation3 + $0x40] sm:$0xff] }
 0x1c2   : > { %1473 = vst [vmem:[#allocation3] sm:$0xff] %v1425_v43  ;;  %1330 = vst [vmem:[%s2480_s17 + $0x8] sm:$0xff] %v1142_v44  ;;  %v1426_v41 = vadd.f32 %v1378_v40, %v1142_v44  ;;  %v1521_v49 = vpack.c.bf16 %v1142_v44, %v1139_v32  ;;  %v1388_v32 = vld [vmem:[#allocation3 + $0x58] sm:$0xff] }
 0x1c3   : > { %1476 = vst [vmem:[#allocation3 + $0x18] sm:$0xff] %v1428_v47  ;;  %1546 = vst [vmem:[#allocation2 + $0x8] sm:$0xff] %v1522_v48  ;;  %v1391_v48 = vld [vmem:[#allocation3 + $0x70] sm:$0xff] }
 0x1c4   : > { %1474 = vst [vmem:[#allocation3 + $0x8] sm:$0xff] %v1426_v41  ;;  %1545 = vst [vmem:[#allocation2] sm:$0xff] %v1521_v49  ;;  %v2565_v51 = vpop.f32.mrb[28].mxu0  ;;  %v1919_v52 = vpop.f32.mrb[28].mxu1 }
 0x1c5   : > { %v1163_v55 = vadd.f32 %v1919_v52, %v937_v1  ;;  %v971_v45 = vpop.f32.mrb[29].mxu0  ;;  %v1154_v56 = vpop.f32.mrb[29].mxu1  ;;  %v1389_v52 = vld [vmem:[#allocation3 + $0x60] sm:$0xff] }
 0x1c6   : > { %v1155_v60 = vadd.f32 %v1154_v56, %v2526_v57  ;;  %v2568_v63 = vpop.f32.mrb[30].mxu0  ;;  %v1920_v0 = vpop.f32.mrb[30].mxu1  ;;  %v1392_v56 = vld [vmem:[#allocation3 + $0x78] sm:$0xff] }
 0x1c7   : > { %1335 = vst [vmem:[%s2480_s17 + $0x30] sm:$0xff] %v1163_v55  ;;  %v1431_v4 = vadd.f32 %v1383_v53, %v1163_v55  ;;  %v1166_v7 = vadd.f32 %v1920_v0, %v2536_v5  ;;  %v974_v8 = vpop.f32.mrb[31].mxu0  ;;  %v1157_v11 = vpop.f32.mrb[31].mxu1 }
 0x1c8   : > { %1333 = vst [vmem:[%s2480_s17 + $0x20] sm:$0xff] %v1155_v60  ;;  %v1429_v1 = vadd.f32 %v1381_v59, %v1155_v60  ;;  %v1158_v15 = vadd.f32 %v1157_v11, %v2530_v61 }
 0x1c9   : > { %1479 = vst [vmem:[#allocation3 + $0x30] sm:$0xff] %v1431_v4  ;;  %1336 = vst [vmem:[%s2480_s17 + $0x38] sm:$0xff] %v1166_v7  ;;  %v1432_v16 = vadd.f32 %v1384_v3, %v1166_v7  ;;  %v1524_v57 = vpack.c.bf16 %v1166_v7, %v1163_v55  ;;  %v1390_v4 = vld [vmem:[#allocation3 + $0x68] sm:$0xff] }
 0x1ca   : > { %1477 = vst [vmem:[#allocation3 + $0x20] sm:$0xff] %v1429_v1  ;;  %1334 = vst [vmem:[%s2480_s17 + $0x28] sm:$0xff] %v1158_v15  ;;  %v1430_v19 = vadd.f32 %v1382_v12, %v1158_v15  ;;  %v1523_v20 = vpack.c.bf16 %v1158_v15, %v1155_v60  ;;  %v1395_v15 = vld [vmem:[#allocation3 + $0x90] sm:$0xff] }
 0x1cb   : > { %1480 = vst [vmem:[#allocation3 + $0x38] sm:$0xff] %v1432_v16  ;;  %1548 = vst [vmem:[#allocation2 + $0x18] sm:$0xff] %v1524_v57 }
 0x1cc   : > { %1478 = vst [vmem:[#allocation3 + $0x28] sm:$0xff] %v1430_v19  ;;  %1547 = vst [vmem:[#allocation2 + $0x10] sm:$0xff] %v1523_v20  ;;  %v2576_v5 = vpop.f32.mrb[32].mxu0  ;;  %v1923_v23 = vpop.f32.mrb[32].mxu1  ;;  %v1393_v19 = vld [vmem:[#allocation3 + $0x80] sm:$0xff] }
 0x1cd   : > { %v1179_v61 = vadd.f32 %v1923_v23, %v2548_v17  ;;  %v979_v26 = vpop.f32.mrb[33].mxu0  ;;  %v1170_v27 = vpop.f32.mrb[33].mxu1 }
 0x1ce   : > { %v1171_v29 = vadd.f32 %v1170_v27, %v2540_v9  ;;  %v2580_v30 = vpop.f32.mrb[34].mxu0  ;;  %v1924_v31 = vpop.f32.mrb[34].mxu1 }
 0x1cf   : > { %1339 = vst [vmem:[%s2480_s17 + $0x50] sm:$0xff] %v1179_v61  ;;  %v1435_v34 = vadd.f32 %v1387_v24, %v1179_v61  ;;  %v1182_v35 = vadd.f32 %v1924_v31, %v2552_v21  ;;  %v982_v36 = vpop.f32.mrb[35].mxu0  ;;  %v1173_v37 = vpop.f32.mrb[35].mxu1  ;;  %v1394_v31 = vld [vmem:[#allocation3 + $0x88] sm:$0xff] }
 0x1d0   : > { %1337 = vst [vmem:[%s2480_s17 + $0x40] sm:$0xff] %v1171_v29  ;;  %v1433_v17 = vadd.f32 %v1385_v28, %v1171_v29  ;;  %v1174_v39 = vadd.f32 %v1173_v37, %v2544_v13 }
 0x1d1   : > { %1483 = vst [vmem:[#allocation3 + $0x50] sm:$0xff] %v1435_v34  ;;  %1340 = vst [vmem:[%s2480_s17 + $0x58] sm:$0xff] %v1182_v35  ;;  %v1436_v40 = vadd.f32 %v1388_v32, %v1182_v35  ;;  %v1526_v9 = vpack.c.bf16 %v1182_v35, %v1179_v61  ;;  %v1396_v61 = vld [vmem:[#allocation3 + $0x98] sm:$0xff] }
 0x1d2   : > { %1481 = vst [vmem:[#allocation3 + $0x40] sm:$0xff] %v1433_v17  ;;  %1338 = vst [vmem:[%s2480_s17 + $0x48] sm:$0xff] %v1174_v39  ;;  %v1434_v43 = vadd.f32 %v1386_v38, %v1174_v39  ;;  %v1525_v44 = vpack.c.bf16 %v1174_v39, %v1171_v29  ;;  %v1399_v39 = vld [vmem:[#allocation3 + $0xb0] sm:$0xff] }
 0x1d3   : > { %1484 = vst [vmem:[#allocation3 + $0x58] sm:$0xff] %v1436_v40  ;;  %1550 = vst [vmem:[#allocation2 + $0x28] sm:$0xff] %v1526_v9 }
 0x1d4   : > { %1482 = vst [vmem:[#allocation3 + $0x48] sm:$0xff] %v1434_v43  ;;  %1549 = vst [vmem:[#allocation2 + $0x20] sm:$0xff] %v1525_v44  ;;  %v985_v21 = vpop.f32.mrb[36].mxu0  ;;  %v1927_v47 = vpop.f32.mrb[36].mxu1  ;;  %v1397_v43 = vld [vmem:[#allocation3 + $0xa0] sm:$0xff] }
 0x1d5   : > { %v1195_v41 = vadd.f32 %v1927_v47, %v2565_v51  ;;  %v987_v13 = vpop.f32.mrb[37].mxu0  ;;  %v1186_v49 = vpop.f32.mrb[37].mxu1 }
 0x1d6   : > { %v1187_v53 = vadd.f32 %v1186_v49, %v2556_v25  ;;  %v988_v55 = vpop.f32.mrb[38].mxu0  ;;  %v1928_v45 = vpop.f32.mrb[38].mxu1 }
 0x1d7   : > { %1343 = vst [vmem:[%s2480_s17 + $0x70] sm:$0xff] %v1195_v41  ;;  %v1439_v59 = vadd.f32 %v1391_v48, %v1195_v41  ;;  %v1198_v60 = vadd.f32 %v1928_v45, %v2568_v63  ;;  %v990_v0 = vpop.f32.mrb[39].mxu0  ;;  %v1189_v3 = vpop.f32.mrb[39].mxu1  ;;  %v1400_v48 = vld [vmem:[#allocation3 + $0xb8] sm:$0xff] }
 0x1d8   : > { %1341 = vst [vmem:[%s2480_s17 + $0x60] sm:$0xff] %v1187_v53  ;;  %v1437_v7 = vadd.f32 %v1389_v52, %v1187_v53  ;;  %v1190_v51 = vadd.f32 %v1189_v3, %v2558_v33 }
 0x1d9   : > { %1487 = vst [vmem:[#allocation3 + $0x70] sm:$0xff] %v1439_v59  ;;  %1344 = vst [vmem:[%s2480_s17 + $0x78] sm:$0xff] %v1198_v60  ;;  %v1440_v8 = vadd.f32 %v1392_v56, %v1198_v60  ;;  %v1528_v11 = vpack.c.bf16 %v1198_v60, %v1195_v41 }
 0x1da   : > { %1485 = vst [vmem:[#allocation3 + $0x60] sm:$0xff] %v1437_v7  ;;  %1342 = vst [vmem:[%s2480_s17 + $0x68] sm:$0xff] %v1190_v51  ;;  %v1438_v25 = vadd.f32 %v1390_v4, %v1190_v51  ;;  %v1527_v12 = vpack.c.bf16 %v1190_v51, %v1187_v53  ;;  %v1398_v53 = vld [vmem:[#allocation3 + $0xa8] sm:$0xff] }
 0x1db   : > { %1488 = vst [vmem:[#allocation3 + $0x78] sm:$0xff] %v1440_v8  ;;  %1552 = vst [vmem:[#allocation2 + $0x38] sm:$0xff] %v1528_v11  ;;  %v1401_v8 = vld [vmem:[#allocation3 + $0xc0] sm:$0xff] }
 0x1dc   : > { %1486 = vst [vmem:[#allocation3 + $0x68] sm:$0xff] %v1438_v25  ;;  %1551 = vst [vmem:[#allocation2 + $0x30] sm:$0xff] %v1527_v12  ;;  %v993_v63 = vpop.f32.mrb[40].mxu0  ;;  %v1931_v1 = vpop.f32.mrb[40].mxu1 }
 0x1dd   : > { %v1211_v16 = vadd.f32 %v1931_v1, %v985_v21  ;;  %v995_v57 = vpop.f32.mrb[41].mxu0  ;;  %v1202_v33 = vpop.f32.mrb[41].mxu1 }
 0x1de   : > { %v1203_v20 = vadd.f32 %v1202_v33, %v2576_v5  ;;  %v996_v23 = vpop.f32.mrb[42].mxu0  ;;  %v1932_v24 = vpop.f32.mrb[42].mxu1 }
 0x1df   : > { %1347 = vst [vmem:[%s2480_s17 + $0x90] sm:$0xff] %v1211_v16  ;;  %v1443_v26 = vadd.f32 %v1395_v15, %v1211_v16  ;;  %v1214_v27 = vadd.f32 %v1932_v24, %v988_v55  ;;  %v998_v28 = vpop.f32.mrb[43].mxu0  ;;  %v1205_v29 = vpop.f32.mrb[43].mxu1  ;;  %v1402_v15 = vld [vmem:[#allocation3 + $0xc8] sm:$0xff] }
 0x1e0   : > { %1345 = vst [vmem:[%s2480_s17 + $0x80] sm:$0xff] %v1203_v20  ;;  %v1441_v32 = vadd.f32 %v1393_v19, %v1203_v20  ;;  %v1206_v34 = vadd.f32 %v1205_v29, %v2580_v30  ;;  %v1404_v29 = vld [vmem:[#allocation3 + $0xd8] sm:$0xff] }
 0x1e1   : > { %1491 = vst [vmem:[#allocation3 + $0x90] sm:$0xff] %v1443_v26  ;;  %1348 = vst [vmem:[%s2480_s17 + $0x98] sm:$0xff] %v1214_v27  ;;  %v1444_v35 = vadd.f32 %v1396_v61, %v1214_v27  ;;  %v1530_v36 = vpack.c.bf16 %v1214_v27, %v1211_v16 }
 0x1e2   : > { %1489 = vst [vmem:[#allocation3 + $0x80] sm:$0xff] %v1441_v32  ;;  %1346 = vst [vmem:[%s2480_s17 + $0x88] sm:$0xff] %v1206_v34  ;;  %v1442_v5 = vadd.f32 %v1394_v31, %v1206_v34  ;;  %v1529_v37 = vpack.c.bf16 %v1206_v34, %v1203_v20 }
 0x1e3   : > { %1492 = vst [vmem:[#allocation3 + $0x98] sm:$0xff] %v1444_v35  ;;  %1554 = vst [vmem:[#allocation2 + $0x48] sm:$0xff] %v1530_v36 }
 0x1e4   : > { %1490 = vst [vmem:[#allocation3 + $0x88] sm:$0xff] %v1442_v5  ;;  %1553 = vst [vmem:[#allocation2 + $0x40] sm:$0xff] %v1529_v37  ;;  %v1001_v38 = vpop.f32.mrb[44].mxu0  ;;  %v1935_v17 = vpop.f32.mrb[44].mxu1 }
 0x1e5   : > { %v1227_v40 = vadd.f32 %v1935_v17, %v1001_v38  ;;  %v1003_v9 = vpop.f32.mrb[45].mxu0  ;;  %v1218_v30 = vpop.f32.mrb[45].mxu1  ;;  %v1405_v17 = vld [vmem:[#allocation3 + $0xe0] sm:$0xff] }
 0x1e6   : > { %v1219_v44 = vadd.f32 %v1218_v30, %v993_v63  ;;  %v1004_v21 = vpop.f32.mrb[46].mxu0  ;;  %v1936_v47 = vpop.f32.mrb[46].mxu1 }
 0x1e7   : > { %1351 = vst [vmem:[%s2480_s17 + $0xb0] sm:$0xff] %v1227_v40  ;;  %v1447_v41 = vadd.f32 %v1399_v39, %v1227_v40  ;;  %v1230_v13 = vadd.f32 %v1936_v47, %v1004_v21  ;;  %v1006_v49 = vpop.f32.mrb[47].mxu0  ;;  %v1221_v52 = vpop.f32.mrb[47].mxu1 }
 0x1e8   : > { %1349 = vst [vmem:[%s2480_s17 + $0xa0] sm:$0xff] %v1219_v44  ;;  %v1445_v55 = vadd.f32 %v1397_v43, %v1219_v44  ;;  %v1222_v45 = vadd.f32 %v1221_v52, %v996_v23  ;;  %v1403_v23 = vld [vmem:[#allocation3 + $0xd0] sm:$0xff] }
 0x1e9   : > { %1495 = vst [vmem:[#allocation3 + $0xb0] sm:$0xff] %v1447_v41  ;;  %1352 = vst [vmem:[%s2480_s17 + $0xb8] sm:$0xff] %v1230_v13  ;;  %v1448_v56 = vadd.f32 %v1400_v48, %v1230_v13  ;;  %v1532_v59 = vpack.c.bf16 %v1230_v13, %v1227_v40 }
 0x1ea   : > { %1493 = vst [vmem:[#allocation3 + $0xa0] sm:$0xff] %v1445_v55  ;;  %1350 = vst [vmem:[%s2480_s17 + $0xa8] sm:$0xff] %v1222_v45  ;;  %v1446_v60 = vadd.f32 %v1398_v53, %v1222_v45  ;;  %v1531_v0 = vpack.c.bf16 %v1222_v45, %v1219_v44  ;;  %v1406_v44 = vld [vmem:[#allocation3 + $0xe8] sm:$0xff]  ;;  %v1407_v55 = vld [vmem:[#allocation3 + $0xf0] sm:$0xff] }
 0x1eb   : > { %1496 = vst [vmem:[#allocation3 + $0xb8] sm:$0xff] %v1448_v56  ;;  %1556 = vst [vmem:[#allocation2 + $0x58] sm:$0xff] %v1532_v59  ;;  %v1415_v56 = vld [vmem:[#allocation3 + $0x130] sm:$0xff] }
 0x1ec   : > { %1494 = vst [vmem:[#allocation3 + $0xa8] sm:$0xff] %v1446_v60  ;;  %1555 = vst [vmem:[#allocation2 + $0x50] sm:$0xff] %v1531_v0  ;;  %v1009_v3 = vpop.f32.mrb[48].mxu0  ;;  %v1939_v4 = vpop.f32.mrb[48].mxu1 }
 0x1ed   : > { %v1011_v7 = vpop.f32.mrb[49].mxu0  ;;  %v1234_v51 = vpop.f32.mrb[49].mxu1 }
 0x1ee   : > { %v1235_v11 = vadd.f32 %v1234_v51, %v1009_v3  ;;  %v1012_v25 = vpop.f32.mrb[50].mxu0  ;;  %v1940_v12 = vpop.f32.mrb[50].mxu1 }
 0x1ef   : > { %v1014_v63 = vpop.f32.mrb[51].mxu0  ;;  %v1237_v1 = vpop.f32.mrb[51].mxu1 }
 0x1f0   : > { %1353 = vst [vmem:[%s2480_s17 + $0xc0] sm:$0xff] %v1235_v11  ;;  %v1449_v16 = vadd.f32 %v1401_v8, %v1235_v11  ;;  %v1238_v57 = vadd.f32 %v1237_v1, %v1012_v25  ;;  %v1408_v8 = vld [vmem:[#allocation3 + $0xf8] sm:$0xff] }
 0x1f1   : > { %v1416_v25 = vld [vmem:[#allocation3 + $0x138] sm:$0xff] }
 0x1f2   : > { %1497 = vst [vmem:[#allocation3 + $0xc0] sm:$0xff] %v1449_v16  ;;  %1354 = vst [vmem:[%s2480_s17 + $0xc8] sm:$0xff] %v1238_v57  ;;  %v1450_v33 = vadd.f32 %v1402_v15, %v1238_v57  ;;  %v1533_v19 = vpack.c.bf16 %v1238_v57, %v1235_v11  ;;  %v1414_v57 = vld [vmem:[#allocation3 + $0x128] sm:$0xff] }
 0x1f4   : > { %1498 = vst [vmem:[#allocation3 + $0xc8] sm:$0xff] %v1450_v33  ;;  %1557 = vst [vmem:[#allocation2 + $0x60] sm:$0xff] %v1533_v19  ;;  %v1017_v20 = vpop.f32.mrb[52].mxu0  ;;  %v1943_v24 = vpop.f32.mrb[52].mxu1 }
 0x1f5   : > { %v1243_v61 = vadd.f32 %v1939_v4, %v1017_v20  ;;  %v1019_v26 = vpop.f32.mrb[53].mxu0  ;;  %v1250_v27 = vpop.f32.mrb[53].mxu1  ;;  %v1413_v4 = vld [vmem:[#allocation3 + $0x120] sm:$0xff] }
 0x1f6   : > { %v1020_v28 = vpop.f32.mrb[54].mxu0  ;;  %v1944_v31 = vpop.f32.mrb[54].mxu1  ;;  %v1409_v26 = vld [vmem:[#allocation3 + $0x100] sm:$0xff] }
 0x1f7   : > { %1355 = vst [vmem:[%s2480_s17 + $0xd0] sm:$0xff] %v1243_v61  ;;  %v1451_v32 = vadd.f32 %v1403_v23, %v1243_v61  ;;  %v1246_v34 = vadd.f32 %v1940_v12, %v1020_v28  ;;  %v1022_v35 = vpop.f32.mrb[55].mxu0  ;;  %v1253_v36 = vpop.f32.mrb[55].mxu1  ;;  %v1419_v28 = vld [vmem:[#allocation3 + $0x150] sm:$0xff] }
 0x1f8   : > { %v1417_v35 = vld [vmem:[#allocation3 + $0x140] sm:$0xff] }
 0x1f9   : > { %1499 = vst [vmem:[#allocation3 + $0xd0] sm:$0xff] %v1451_v32  ;;  %1356 = vst [vmem:[%s2480_s17 + $0xd8] sm:$0xff] %v1246_v34  ;;  %v1452_v5 = vadd.f32 %v1404_v29, %v1246_v34  ;;  %v1534_v37 = vpack.c.bf16 %v1246_v34, %v1243_v61 }
 0x1fb   : > { %1500 = vst [vmem:[#allocation3 + $0xd8] sm:$0xff] %v1452_v5  ;;  %1558 = vst [vmem:[#allocation2 + $0x68] sm:$0xff] %v1534_v37  ;;  %v1410_v37 = vld [vmem:[#allocation3 + $0x108] sm:$0xff] }
 0x1fc   : > { %v1025_v38 = vpop.f32.mrb[56].mxu0  ;;  %v2610_v39 = vpop.f32.mrb[56].mxu1 }
 0x1fd   : > { %v1251_v40 = vadd.f32 %v1250_v27, %v1025_v38  ;;  %v1027_v9 = vpop.f32.mrb[57].mxu0  ;;  %v2612_v30 = vpop.f32.mrb[57].mxu1 }
 0x1fe   : > { %v1028_v43 = vpop.f32.mrb[58].mxu0  ;;  %v2614_v21 = vpop.f32.mrb[58].mxu1 }
 0x1ff   : > { %1357 = vst [vmem:[%s2480_s17 + $0xe0] sm:$0xff] %v1251_v40  ;;  %v1453_v47 = vadd.f32 %v1405_v17, %v1251_v40  ;;  %v1254_v48 = vadd.f32 %v1253_v36, %v1028_v43  ;;  %v1030_v41 = vpop.f32.mrb[59].mxu0  ;;  %v2617_v13 = vpop.f32.mrb[59].mxu1  ;;  %v1420_v17 = vld [vmem:[#allocation3 + $0x158] sm:$0xff] }
 0x201   : > { %1501 = vst [vmem:[#allocation3 + $0xe0] sm:$0xff] %v1453_v47  ;;  %1358 = vst [vmem:[%s2480_s17 + $0xe8] sm:$0xff] %v1254_v48  ;;  %v1454_v49 = vadd.f32 %v1406_v44, %v1254_v48  ;;  %v1535_v52 = vpack.c.bf16 %v1254_v48, %v1251_v40  ;;  %v1418_v47 = vld [vmem:[#allocation3 + $0x148] sm:$0xff] }
 0x203   : > { %1502 = vst [vmem:[#allocation3 + $0xe8] sm:$0xff] %v1454_v49  ;;  %1559 = vst [vmem:[#allocation2 + $0x70] sm:$0xff] %v1535_v52 }
 0x204   : > { %v1033_v53 = vpop.f32.mrb[60].mxu0  ;;  %v1951_v45 = vpop.f32.mrb[60].mxu1 }
 0x205   : > { %v1259_v59 = vadd.f32 %v1943_v24, %v1033_v53  ;;  %v1291_v60 = vadd.f32 %v1951_v45, %v2522_v50  ;;  %v1035_v0 = vpop.f32.mrb[61].mxu0  ;;  %v1282_v3 = vpop.f32.mrb[61].mxu1 }
 0x206   : > { %v1283_v7 = vadd.f32 %v1282_v3, %v2516_v42  ;;  %v1036_v51 = vpop.f32.mrb[62].mxu0  ;;  %v1952_v11 = vpop.f32.mrb[62].mxu1 }
 0x207   : > { %1359 = vst [vmem:[%s2480_s17 + $0xf0] sm:$0xff] %v1259_v59  ;;  %v1455_v12 = vadd.f32 %v1407_v55, %v1259_v59  ;;  %1367 = vst [vmem:[%s2480_s17 + $0x130] sm:$0xff] %v1291_v60  ;;  %v1463_v63 = vadd.f32 %v1415_v56, %v1291_v60  ;;  %v1262_v1 = vadd.f32 %v1944_v31, %v1036_v51  ;;  %v1038_v50 = vpop.f32.mrb[63].mxu0  ;;  %v1285_v16 = vpop.f32.mrb[63].mxu1  ;;  %v1411_v55 = vld [vmem:[#allocation3 + $0x110] sm:$0xff] }
 0x208   : > { %v1294_v15 = vadd.f32 %v1952_v11, %v2524_v54  ;;  %1365 = vst [vmem:[%s2480_s17 + $0x120] sm:$0xff] %v1283_v7  ;;  %v1461_v33 = vadd.f32 %v1413_v4, %v1283_v7  ;;  %v1286_v42 = vadd.f32 %v1285_v16, %v2520_v46  ;;  %v1423_v56 = vld [vmem:[#allocation3 + $0x170] sm:$0xff]  ;;  %v1421_v4 = vld [vmem:[#allocation3 + $0x160] sm:$0xff]  ;;  %v1422_v50 = vld [vmem:[#allocation3 + $0x168] sm:$0xff] }
 0x209   : > { %1503 = vst [vmem:[#allocation3 + $0xf0] sm:$0xff] %v1455_v12  ;;  %1511 = vst [vmem:[#allocation3 + $0x130] sm:$0xff] %v1463_v63  ;;  %v1456_v19 = vadd.f32 %v1408_v8, %v1262_v1  ;;  %v1536_v20 = vpack.c.bf16 %v1262_v1, %v1259_v59  ;;  %v1412_v8 = vld [vmem:[#allocation3 + $0x118] sm:$0xff] }
 0x20a   : > { %1360 = vst [vmem:[%s2480_s17 + $0xf8] sm:$0xff] %v1262_v1  ;;  %1368 = vst [vmem:[%s2480_s17 + $0x138] sm:$0xff] %v1294_v15  ;;  %v1464_v23 = vadd.f32 %v1416_v25, %v1294_v15  ;;  %v1540_v24 = vpack.c.bf16 %v1294_v15, %v1291_v60  ;;  %v1462_v61 = vadd.f32 %v1414_v57, %v1286_v42  ;;  %v1424_v25 = vld [vmem:[#allocation3 + $0x178] sm:$0xff] }
 0x20b   : > { %1509 = vst [vmem:[#allocation3 + $0x120] sm:$0xff] %v1461_v33  ;;  %1366 = vst [vmem:[%s2480_s17 + $0x128] sm:$0xff] %v1286_v42  ;;  %v1539_v54 = vpack.c.bf16 %v1286_v42, %v1283_v7 }
 0x20c   : > { %1504 = vst [vmem:[#allocation3 + $0xf8] sm:$0xff] %v1456_v19  ;;  %1560 = vst [vmem:[#allocation2 + $0x78] sm:$0xff] %v1536_v20  ;;  %v1041_v46 = vpop.f32.mrb[64].mxu0  ;;  %v1955_v27 = vpop.f32.mrb[64].mxu1  ;;  %v1574_v20 = vld [vmem:[#allocation3 + $0x8] sm:$0xff] (!%p1859_p10) }
 0x20d   : > { %1512 = vst [vmem:[#allocation3 + $0x138] sm:$0xff] %v1464_v23  ;;  %1564 = vst [vmem:[#allocation2 + $0x98] sm:$0xff] %v1540_v24  ;;  %v1267_v29 = vadd.f32 %v2612_v30, %v1041_v46  ;;  %v1307_v31 = vadd.f32 %v1955_v27, %v2534_v2  ;;  %v1043_v32 = vpop.f32.mrb[65].mxu0  ;;  %v1298_v34 = vpop.f32.mrb[65].mxu1  ;;  %v1575_v23 = vld [vmem:[#allocation3 + $0x10] sm:$0xff] (!%p1859_p10)  ;;  %v1576_v24 = vld [vmem:[#allocation3 + $0x18] sm:$0xff] (!%p1859_p10) }
 0x20e   : > { %1510 = vst [vmem:[#allocation3 + $0x128] sm:$0xff] %v1462_v61  ;;  %1563 = vst [vmem:[#allocation2 + $0x90] sm:$0xff] %v1539_v54  ;;  %v1299_v36 = vadd.f32 %v1298_v34, %v2528_v58  ;;  %v1044_v5 = vpop.f32.mrb[66].mxu0  ;;  %v1956_v38 = vpop.f32.mrb[66].mxu1  ;;  %v1577_v61 = vld [vmem:[#allocation3 + $0x20] sm:$0xff] (!%p1859_p10)  ;;  %v1578_v54 = vld [vmem:[#allocation3 + $0x28] sm:$0xff] (!%p1859_p10) }
 0x20f   : > { %1361 = vst [vmem:[%s2480_s17 + $0x100] sm:$0xff] %v1267_v29  ;;  %v1457_v40 = vadd.f32 %v1409_v26, %v1267_v29  ;;  %1371 = vst [vmem:[%s2480_s17 + $0x150] sm:$0xff] %v1307_v31  ;;  %v1467_v9 = vadd.f32 %v1419_v28, %v1307_v31  ;;  %v1270_v30 = vadd.f32 %v2617_v13, %v1044_v5  ;;  %v1046_v43 = vpop.f32.mrb[67].mxu0  ;;  %v1301_v44 = vpop.f32.mrb[67].mxu1  ;;  %v1579_v46 = vld [vmem:[#allocation3 + $0x30] sm:$0xff] (!%p1859_p10)  ;;  %v1580_v26 = vld [vmem:[#allocation3 + $0x38] sm:$0xff] (!%p1859_p10) }
 0x210   : > { %v1310_v2 = vadd.f32 %v1956_v38, %v2538_v6  ;;  %1369 = vst [vmem:[%s2480_s17 + $0x140] sm:$0xff] %v1299_v36  ;;  %v1465_v58 = vadd.f32 %v1417_v35, %v1299_v36  ;;  %v1302_v48 = vadd.f32 %v1301_v44, %v2532_v62  ;;  %1622 = vst [vmem:[#allocation10 + $0x8] sm:$0xff] (!%p1859_p10), %v1574_v20  ;;  %v1581_v27 = vld [vmem:[#allocation3 + $0x40] sm:$0xff] (!%p1859_p10)  ;;  %v1582_v28 = vld [vmem:[#allocation3 + $0x48] sm:$0xff] (!%p1859_p10) }
 0x211   : > { %1505 = vst [vmem:[#allocation3 + $0x100] sm:$0xff] %v1457_v40  ;;  %1515 = vst [vmem:[#allocation3 + $0x150] sm:$0xff] %v1467_v9  ;;  %v1458_v41 = vadd.f32 %v1410_v37, %v1270_v30  ;;  %v1537_v49 = vpack.c.bf16 %v1270_v30, %v1267_v29  ;;  %v1583_v29 = vld [vmem:[#allocation3 + $0x50] sm:$0xff] (!%p1859_p10)  ;;  %v1585_v32 = vld [vmem:[#allocation3 + $0x60] sm:$0xff] (!%p1859_p10) }
 0x212   : > { %1362 = vst [vmem:[%s2480_s17 + $0x108] sm:$0xff] %v1270_v30  ;;  %1372 = vst [vmem:[%s2480_s17 + $0x158] sm:$0xff] %v1310_v2  ;;  %v1468_v52 = vadd.f32 %v1420_v17, %v1310_v2  ;;  %v1542_v53 = vpack.c.bf16 %v1310_v2, %v1307_v31  ;;  %v1466_v13 = vadd.f32 %v1418_v47, %v1302_v48  ;;  %v1584_v31 = vld [vmem:[#allocation3 + $0x58] sm:$0xff] (!%p1859_p10)  ;;  %v1586_v34 = vld [vmem:[#allocation3 + $0x68] sm:$0xff] (!%p1859_p10) }
 0x213   : > { %1513 = vst [vmem:[#allocation3 + $0x140] sm:$0xff] %v1465_v58  ;;  %1370 = vst [vmem:[%s2480_s17 + $0x148] sm:$0xff] %v1302_v48  ;;  %v1541_v6 = vpack.c.bf16 %v1302_v48, %v1299_v36  ;;  %v1587_v35 = vld [vmem:[#allocation3 + $0x70] sm:$0xff] (!%p1859_p10)  ;;  %v1588_v36 = vld [vmem:[#allocation3 + $0x78] sm:$0xff] (!%p1859_p10) }
 0x214   : > { %1506 = vst [vmem:[#allocation3 + $0x108] sm:$0xff] %v1458_v41  ;;  %1561 = vst [vmem:[#allocation2 + $0x80] sm:$0xff] %v1537_v49  ;;  %v1049_v62 = vpop.f32.mrb[68].mxu0  ;;  %v1959_v45 = vpop.f32.mrb[68].mxu1  ;;  %v1589_v5 = vld [vmem:[#allocation3 + $0x80] sm:$0xff] (!%p1859_p10)  ;;  %v1590_v37 = vld [vmem:[#allocation3 + $0x88] sm:$0xff] (!%p1859_p10) }
 0x215   : > { %1516 = vst [vmem:[#allocation3 + $0x158] sm:$0xff] %v1468_v52  ;;  %1566 = vst [vmem:[#allocation2 + $0xa8] sm:$0xff] %v1542_v53  ;;  %v1275_v59 = vadd.f32 %v2610_v39, %v1049_v62  ;;  %v1323_v60 = vadd.f32 %v1959_v45, %v2550_v18  ;;  %v1051_v0 = vpop.f32.mrb[69].mxu0  ;;  %v1314_v3 = vpop.f32.mrb[69].mxu1  ;;  %v1591_v38 = vld [vmem:[#allocation3 + $0x90] sm:$0xff] (!%p1859_p10)  ;;  %v1592_v17 = vld [vmem:[#allocation3 + $0x98] sm:$0xff] (!%p1859_p10) }
 0x216   : > { %1514 = vst [vmem:[#allocation3 + $0x148] sm:$0xff] %v1466_v13  ;;  %1565 = vst [vmem:[#allocation2 + $0xa0] sm:$0xff] %v1541_v6  ;;  %v1315_v7 = vadd.f32 %v1314_v3, %v2542_v10  ;;  %v1052_v51 = vpop.f32.mrb[70].mxu0  ;;  %v1960_v11 = vpop.f32.mrb[70].mxu1  ;;  %v1593_v40 = vld [vmem:[#allocation3 + $0xa0] sm:$0xff] (!%p1859_p10)  ;;  %v1594_v9 = vld [vmem:[#allocation3 + $0xa8] sm:$0xff] (!%p1859_p10) }
 0x217   : > { %1363 = vst [vmem:[%s2480_s17 + $0x110] sm:$0xff] %v1275_v59  ;;  %v1459_v12 = vadd.f32 %v1411_v55, %v1275_v59  ;;  %1375 = vst [vmem:[%s2480_s17 + $0x170] sm:$0xff] %v1323_v60  ;;  %v1471_v63 = vadd.f32 %v1423_v56, %v1323_v60  ;;  %v1278_v39 = vadd.f32 %v2614_v21, %v1052_v51  ;;  %v1054_v1 = vpop.f32.mrb[71].mxu0  ;;  %v1317_v15 = vpop.f32.mrb[71].mxu1  ;;  %v1595_v30 = vld [vmem:[#allocation3 + $0xb0] sm:$0xff] (!%p1859_p10)  ;;  %v1596_v2 = vld [vmem:[#allocation3 + $0xb8] sm:$0xff] (!%p1859_p10) }
 0x218   : > { %v1326_v18 = vadd.f32 %v1960_v11, %v2554_v22  ;;  %1373 = vst [vmem:[%s2480_s17 + $0x160] sm:$0xff] %v1315_v7  ;;  %v1469_v10 = vadd.f32 %v1421_v4, %v1315_v7  ;;  %v1318_v16 = vadd.f32 %v1317_v15, %v2546_v14  ;;  %1572 = sbr.rel (%p1859_p10) target bundleno = 566 (0x236), region = 44  ;;  %v1573_v14 = vld [vmem:[#allocation3] sm:$0xff] (!%p1859_p10)  ;;  %1623 = vst [vmem:[#allocation10 + $0x10] sm:$0xff] (!%p1859_p10), %v1575_v23  ;;  %v1598_v44 = vld [vmem:[#allocation3 + $0xc8] sm:$0xff] (!%p1859_p10) }
 0x219   : > { %1507 = vst [vmem:[#allocation3 + $0x110] sm:$0xff] %v1459_v12  ;;  %1519 = vst [vmem:[#allocation3 + $0x170] sm:$0xff] %v1471_v63  ;;  %v1460_v57 = vadd.f32 %v1412_v8, %v1278_v39  ;;  %v1538_v33 = vpack.c.bf16 %v1278_v39, %v1275_v59  ;;  %v1597_v43 = vld [vmem:[#allocation3 + $0xc0] sm:$0xff] (!%p1859_p10)  ;;  %v1599_v47 = vld [vmem:[#allocation3 + $0xd0] sm:$0xff] (!%p1859_p10) }
 0x21a   : > { %1364 = vst [vmem:[%s2480_s17 + $0x118] sm:$0xff] %v1278_v39  ;;  %1376 = vst [vmem:[%s2480_s17 + $0x178] sm:$0xff] %v1326_v18  ;;  %v1472_v42 = vadd.f32 %v1424_v25, %v1326_v18  ;;  %v1544_v19 = vpack.c.bf16 %v1326_v18, %v1323_v60  ;;  %v1470_v21 = vadd.f32 %v1422_v50, %v1318_v16  ;;  %v1600_v58 = vld [vmem:[#allocation3 + $0xd8] sm:$0xff] (!%p1859_p10)  ;;  %v1601_v48 = vld [vmem:[#allocation3 + $0xe0] sm:$0xff] (!%p1859_p10) }
 0x21b   : > { %1517 = vst [vmem:[#allocation3 + $0x160] sm:$0xff] %v1469_v10  ;;  %1374 = vst [vmem:[%s2480_s17 + $0x168] sm:$0xff] %v1318_v16  ;;  %v1543_v22 = vpack.c.bf16 %v1318_v16, %v1315_v7  ;;  %v1602_v41 = vld [vmem:[#allocation3 + $0xe8] sm:$0xff] (!%p1859_p10)  ;;  %v1603_v49 = vld [vmem:[#allocation3 + $0xf0] sm:$0xff] (!%p1859_p10) }
 0x21c   : > { %1508 = vst [vmem:[#allocation3 + $0x118] sm:$0xff] %v1460_v57  ;;  %1562 = vst [vmem:[#allocation2 + $0x88] sm:$0xff] %v1538_v33  ;;  %v1604_v52 = vld [vmem:[#allocation3 + $0xf8] sm:$0xff] (!%p1859_p10)  ;;  %v1605_v53 = vld [vmem:[#allocation3 + $0x100] sm:$0xff] (!%p1859_p10) }
 0x21d   : > { %1520 = vst [vmem:[#allocation3 + $0x178] sm:$0xff] %v1472_v42  ;;  %1568 = vst [vmem:[#allocation2 + $0xb8] sm:$0xff] %v1544_v19  ;;  %v1606_v13 = vld [vmem:[#allocation3 + $0x108] sm:$0xff] (!%p1859_p10)  ;;  %v1609_v55 = vld [vmem:[#allocation3 + $0x120] sm:$0xff] (!%p1859_p10) }
 0x21e   : > { %1518 = vst [vmem:[#allocation3 + $0x168] sm:$0xff] %v1470_v21  ;;  %1567 = vst [vmem:[#allocation2 + $0xb0] sm:$0xff] %v1543_v22  ;;  %v1610_v45 = vld [vmem:[#allocation3 + $0x128] sm:$0xff] (!%p1859_p10)  ;;  %v1611_v56 = vld [vmem:[#allocation3 + $0x130] sm:$0xff] (!%p1859_p10) }
 0x21f   : > { %1621 = vst [vmem:[#allocation10] sm:$0xff] %v1573_v14  ;;  %1624 = vst [vmem:[#allocation10 + $0x18] sm:$0xff] %v1576_v24  ;;  %v1612_v59 = vld [vmem:[#allocation3 + $0x138] sm:$0xff]  ;;  %v1613_v60 = vld [vmem:[#allocation3 + $0x140] sm:$0xff] }
 0x220   : > { %1625 = vst [vmem:[#allocation10 + $0x20] sm:$0xff] %v1577_v61  ;;  %1626 = vst [vmem:[#allocation10 + $0x28] sm:$0xff] %v1578_v54  ;;  %v1607_v6 = vld [vmem:[#allocation3 + $0x110] sm:$0xff]  ;;  %v1614_v0 = vld [vmem:[#allocation3 + $0x148] sm:$0xff] }
 0x221   : > { %1627 = vst [vmem:[#allocation10 + $0x30] sm:$0xff] %v1579_v46  ;;  %1628 = vst [vmem:[#allocation10 + $0x38] sm:$0xff] %v1580_v26  ;;  %v1615_v3 = vld [vmem:[#allocation3 + $0x150] sm:$0xff]  ;;  %v1616_v4 = vld [vmem:[#allocation3 + $0x158] sm:$0xff] }
 0x222   : > { %1629 = vst [vmem:[#allocation10 + $0x40] sm:$0xff] %v1581_v27  ;;  %1630 = vst [vmem:[#allocation10 + $0x48] sm:$0xff] %v1582_v28  ;;  %v1617_v7 = vld [vmem:[#allocation3 + $0x160] sm:$0xff]  ;;  %v1619_v8 = vld [vmem:[#allocation3 + $0x170] sm:$0xff] }
 0x223   : > { %1631 = vst [vmem:[#allocation10 + $0x50] sm:$0xff] %v1583_v29  ;;  %1632 = vst [vmem:[#allocation10 + $0x58] sm:$0xff] %v1584_v31  ;;  %v1608_v62 = vld [vmem:[#allocation3 + $0x118] sm:$0xff] }
 0x224   : > { %1633 = vst [vmem:[#allocation10 + $0x60] sm:$0xff] %v1585_v32  ;;  %1634 = vst [vmem:[#allocation10 + $0x68] sm:$0xff] %v1586_v34  ;;  %v1620_v11 = vld [vmem:[#allocation3 + $0x178] sm:$0xff] }
 0x225   : > { %1635 = vst [vmem:[#allocation10 + $0x70] sm:$0xff] %v1587_v35  ;;  %1636 = vst [vmem:[#allocation10 + $0x78] sm:$0xff] %v1588_v36  ;;  %v1618_v51 = vld [vmem:[#allocation3 + $0x168] sm:$0xff] }
 0x226   : > { %1637 = vst [vmem:[#allocation10 + $0x80] sm:$0xff] %v1589_v5  ;;  %1638 = vst [vmem:[#allocation10 + $0x88] sm:$0xff] %v1590_v37 }
 0x227   : > { %1639 = vst [vmem:[#allocation10 + $0x90] sm:$0xff] %v1591_v38  ;;  %1640 = vst [vmem:[#allocation10 + $0x98] sm:$0xff] %v1592_v17 }
 0x228   : > { %1641 = vst [vmem:[#allocation10 + $0xa0] sm:$0xff] %v1593_v40  ;;  %1642 = vst [vmem:[#allocation10 + $0xa8] sm:$0xff] %v1594_v9 }
 0x229   : > { %1643 = vst [vmem:[#allocation10 + $0xb0] sm:$0xff] %v1595_v30  ;;  %1644 = vst [vmem:[#allocation10 + $0xb8] sm:$0xff] %v1596_v2 }
 0x22a   : > { %1645 = vst [vmem:[#allocation10 + $0xc0] sm:$0xff] %v1597_v43  ;;  %1646 = vst [vmem:[#allocation10 + $0xc8] sm:$0xff] %v1598_v44 }
 0x22b   : > { %1647 = vst [vmem:[#allocation10 + $0xd0] sm:$0xff] %v1599_v47  ;;  %1648 = vst [vmem:[#allocation10 + $0xd8] sm:$0xff] %v1600_v58 }
 0x22c   : > { %1649 = vst [vmem:[#allocation10 + $0xe0] sm:$0xff] %v1601_v48  ;;  %1650 = vst [vmem:[#allocation10 + $0xe8] sm:$0xff] %v1602_v41 }
 0x22d   : > { %1651 = vst [vmem:[#allocation10 + $0xf0] sm:$0xff] %v1603_v49  ;;  %1652 = vst [vmem:[#allocation10 + $0xf8] sm:$0xff] %v1604_v52 }
 0x22e   : > { %1653 = vst [vmem:[#allocation10 + $0x100] sm:$0xff] %v1605_v53  ;;  %1654 = vst [vmem:[#allocation10 + $0x108] sm:$0xff] %v1606_v13 }
 0x22f   : > { %1655 = vst [vmem:[#allocation10 + $0x110] sm:$0xff] %v1607_v6  ;;  %1656 = vst [vmem:[#allocation10 + $0x118] sm:$0xff] %v1608_v62 }
 0x230   : > { %1657 = vst [vmem:[#allocation10 + $0x120] sm:$0xff] %v1609_v55  ;;  %1658 = vst [vmem:[#allocation10 + $0x128] sm:$0xff] %v1610_v45 }
 0x231   : > { %1659 = vst [vmem:[#allocation10 + $0x130] sm:$0xff] %v1611_v56  ;;  %1660 = vst [vmem:[#allocation10 + $0x138] sm:$0xff] %v1612_v59 }
 0x232   : > { %1661 = vst [vmem:[#allocation10 + $0x140] sm:$0xff] %v1613_v60  ;;  %1662 = vst [vmem:[#allocation10 + $0x148] sm:$0xff] %v1614_v0 }
 0x233   : > { %1663 = vst [vmem:[#allocation10 + $0x150] sm:$0xff] %v1615_v3  ;;  %1664 = vst [vmem:[#allocation10 + $0x158] sm:$0xff] %v1616_v4 }
 0x234   : > { %1665 = vst [vmem:[#allocation10 + $0x160] sm:$0xff] %v1617_v7  ;;  %1666 = vst [vmem:[#allocation10 + $0x168] sm:$0xff] %v1618_v51 }
 0x235   : > { %1667 = vst [vmem:[#allocation10 + $0x170] sm:$0xff] %v1619_v8  ;;  %1668 = vst [vmem:[#allocation10 + $0x178] sm:$0xff] %v1620_v11 }
 0x236 PF: > { %s1994_s24 = smul.u32 6144, %s2375_s16  ;;  %s1683_s19 = sshll.u32 %s2480_s17, 4  ;;  %s2662_s19 = int_to_ptr.vmem [resolvable:$true] %s1683_s19 }
 0x237   : > { %s2666_s30 = scalar_lea.sflag [#allocation6], %s173_s27  ;;  %s2221_s4 = scalar_lea.vmem %s2662_s19, 6144 }
 0x238   : > { %s2660_s28 = scalar_lea.hbm %s2731_s2, %s1994_s24  ;;  %p2222_p11 = scmp.ne.s32.totalorder %s2662_s19, %s2221_s4 }
 0x239   : > { %p2747_p0 = scmp.ne.s32.totalorder %s2737_s22, 0  ;;  %s2330_s5 = smov [#allocation9]  }
 0x23a   : > { %s2225_s6 = sshll.u32 %s2330_s5, 4  ;;  %s2226_s6 = int_to_ptr.vmem [resolvable:$false] %s2225_s6 }
 0x23b   : > { %p2223_p3 = pnand %p2222_p11, %p2747_p0  ;;  %s2227_s7 = scalar_lea.vmem %s2226_s6, 12288 }
 0x23c   : > { %p2228_p7 = scmp.lt.s32.totalorder %s2662_s19, %s2226_s6  ;;  %p2229_p8 = scmp.lt.s32.totalorder %s2227_s7, %s2221_s4 }
 0x23d   : > { %p2224_p4 = pneg %p2223_p3 }
 0x23e   : > { %p2230_p12 = por %p2229_p8, %p2228_p7 }
 0x240   : > { %p2231_p2 = pnand %p2230_p12, %p2224_p4 }
 0x242   : > { %2234 = shalt.err (!%p2231_p2)
}
 0x243   : > { %s2235_s26 = scalar_lea.hbm %s2660_s28, 6144  ;;  %s2239_s10 = scalar_lea.hbm %s2731_s2, 12288 }
 0x244   : > { %p2236_p1 = scmp.ne.s32.totalorder %s2660_s28, %s2235_s26  ;;  %p2240_p9 = scmp.lt.u32.totalorder %s2660_s28, %s2731_s2 }
 0x245   : > { %p2241_p13 = scmp.lt.u32.totalorder %s2239_s10, %s2235_s26  ;;  %p2243_p11 = scmp.lt.u32.totalorder %s2235_s26, %s2660_s28 }
 0x246   : > { %p2237_p5 = pnand %p2236_p1, %p2747_p0 }
 0x247   : > { %p2242_p10 = por %p2241_p13, %p2240_p9 }
 0x248   : > { %p2238_p6 = pneg %p2237_p5 }
 0x249   : > { %p2244_p3 = por %p2243_p11, %p2242_p10 }
 0x24b   : > { %p2245_p4 = pnand %p2244_p3, %p2238_p6 }
 0x24d   : > { %2248 = shalt.err (!%p2245_p4)
}
 0x24e   : > { %s2331_s29 = smov 128   ;;  %s2332_s17 = smov 8  }
 0x24f   : > { %2003 = dma.vmem_to_hbm [thread:$0]  (%p2747_p0), %s2662_s19, 6144, %s2660_s28, %s2666_s30, %s2331_s29, %s2331_s29, %s2332_s17  }
 0x250   : > { %s2333_s24 = smov [#allocation10]   ;;  %p2748_p8 = scmp.eq.s32.totalorder %s2375_s16, 1 }
 0x251   : > { %s1696_s20 = sshll.u32 %s2333_s24, 4  ;;  %s1697_s20 = int_to_ptr.vmem [resolvable:$true] %s1696_s20 }
 0x252   : > { %s2249_s25 = scalar_lea.vmem %s1697_s20, 6144  ;;  %p2256_p1 = scmp.lt.s32.totalorder %s1697_s20, %s1697_s20 }
 0x253   : > { %p2250_p7 = scmp.ne.s32.totalorder %s1697_s20, %s2249_s25  ;;  %p2257_p5 = scmp.lt.s32.totalorder %s2249_s25, %s2249_s25 }
 0x255   : > { %p2251_p12 = pnand %p2250_p7, %p2748_p8  ;;  %p2258_p6 = por %p2257_p5, %p2256_p1 }
 0x257   : > { %p2252_p2 = pneg %p2251_p12 }
 0x259   : > { %p2259_p9 = pnand %p2258_p6, %p2252_p2 }
 0x25b   : > { %2262 = shalt.err (!%p2259_p9)
}
 0x25c   : > { %s2263_s6 = scalar_lea.hbm %s2732_s3, 6144  ;;  %p2749_p13 = pmov %p2748_p8 }
 0x25d   : > { %p2264_p0 = scmp.ne.s32.totalorder %s2732_s3, %s2263_s6  ;;  %p2269_p3 = scmp.lt.u32.totalorder %s2263_s6, %s2732_s3 }
 0x25f   : > { %p2265_p10 = pnand %p2264_p0, %p2749_p13 }
 0x261   : > { %p2266_p11 = pneg %p2265_p10 }
 0x263   : > { %p2271_p4 = pnand %p2269_p3, %p2266_p11 }
 0x265   : > { %2274 = shalt.err (!%p2271_p4)
}
 0x266   : > { %p2750_p7 = pmov %p2748_p8 }
 0x268   : > { %2005 = dma.vmem_to_hbm [thread:$0]  (%p2750_p7), %s1697_s20, 6144, %s2732_s3, [#allocation11], %s2331_s29, %s2331_s29, %s2332_s17  }
 0x269   : > { %p2751_p8 = pmov %p2750_p7 }
 0x26a   : > { %p2752_p12 = pmov %p2750_p7 }
 0x26b   : > { %2300 = dma.done.wait (%p2751_p8), [#allocation11], 6144  }
 0x26c   : > { %2302 = vsyncadd (%p2752_p12), [#allocation11], 4294961152 }
 0x26d PF: > { %p2026_p2 = scmp.ge.s32.totalorder %s2321_s15, 2  ;;  %s1715_s8 = sand.u32 1, %s2309_s12  }
 0x26e   : > { %p2753_p1 = scmp.ne.s32.totalorder %s2738_s23, 0  ;;  %s1716_s9 = scalar_lea.sflag [#allocation6], %s1715_s8 }
 0x270   : > { %p2017_p5 = pnand %p2026_p2, %p2753_p1 }
 0x272   : > { %2304 = dma.done.wait (!%p2017_p5), %s1716_s9, 6144  }
 0x273   : > { %2306 = vsyncadd (!%p2017_p5), %s1716_s9, 4294961152  ;;  %p17_p6 = scmp.ge.s32.totalorder %s2379_s18, 4   ;;  %s2754_s12 = smov %s2313_s13 }
 0x274   : > { %s2755_s13 = smov %s2317_s14  ;;  %s2756_s14 = smov %s2390_s21 }
 0x275   : > { %s2757_s15 = smov %s2379_s18  ;;  %19 = sbr.rel (!%p17_p6) target bundleno = 6 (0x6), region = 85 }
 0x27c   :  { %1721 = vsyncpa [#allocation5], 1 }
 0x27d   :  { %1723 = vsyncpa [#allocation5 + $0x1], 1 }
 0x27e   :  { %1724 = vsyncpa [#allocation8], 1 }
 0x27f   :  { %1725 = vsyncpa [#allocation6], 1 }
 0x280   :  { %1727 = vsyncpa [#allocation6 + $0x1], 1 }
 0x281   :  { %1728 = vsyncpa [#allocation11], 1 }

</bundles_post_ra>
